<compile_context>
chip_gen: v6e
topology: v6e:2x2x1
jax: 0.10.0
libtpu: 0.0.40
codegen_flags: <defaults>
</compile_context>

<pallas_src>
import jax
import jax.numpy as jnp
from jax import lax
from jax.experimental import pallas as pl
from jax.experimental.pallas import tpu as pltpu


def _pick_tile(dim, align, cap):
    """Largest multiple-of-`align` divisor of `dim` <= cap; full dim if unaligned."""
    if dim % align != 0:
        return dim                      # full-dim block (allowed by Pallas)
    t = min(cap, dim)
    t -= t % align
    while t > 0 and dim % t != 0:
        t -= align
    return t if t > 0 else dim


def _pick_tt(T, bytes_per_step, budget=8 << 20, max_unroll=32):
    """Timesteps per LSTM grid step: divides T, bounded unroll, and the
    double-buffered time-major blocks stay within a v7x-safe VMEM budget."""
    best = 1
    for tt in range(1, T + 1):
        if T % tt != 0 or tt > max_unroll:
            continue
        if 2 * tt * bytes_per_step > budget:
            continue
        best = tt
    return best


# ----------------------------------------------------------------------------
# Generic tiled matmul + bias:  Y = X @ W + b    (X:[M,K], W:[K,N], b:[1,N])
# Used for the hoisted encoder/decoder input projections and the vocab
# projection.  No per-call padding / output slicing: tiles divide the dims (or
# fall back to a full-dim block).  f32 accumulation regardless of input dtype.
# ----------------------------------------------------------------------------
def _matmul_bias_kernel(x_ref, w_ref, b_ref, o_ref):
    o_ref[...] = (jnp.dot(x_ref[...], w_ref[...],
                          preferred_element_type=jnp.float32)
                  + b_ref[...]).astype(o_ref.dtype)


def matmul_bias_pallas(x, w, b, *, out_dtype=jnp.float32, tm_cap=1024, tn_cap=512):
    M, K = x.shape
    N = w.shape[1]
    tm = _pick_tile(M, 8, tm_cap)      # large tm => few passes over W
    tn = _pick_tile(N, 128, tn_cap)    # lane-dense output tiles when possible

    out_bytes = jnp.dtype(out_dtype).itemsize
    vmem_need = 2 * (tm * K * x.dtype.itemsize + K * tn * w.dtype.itemsize
                     + tn * b.dtype.itemsize + tm * tn * out_bytes)
    cost = pl.CostEstimate(
        flops=int(2 * M * K * N),
        transcendentals=0,
        bytes_accessed=int(x.size * x.dtype.itemsize + w.size * w.dtype.itemsize
                           + b.size * b.dtype.itemsize + M * N * out_bytes))

    return pl.pallas_call(
        _matmul_bias_kernel,
        out_shape=jax.ShapeDtypeStruct((M, N), out_dtype),
        grid_spec=pltpu.PrefetchScalarGridSpec(
            num_scalar_prefetch=0,
            grid=(M // tm, N // tn),
            in_specs=[
                pl.BlockSpec((tm, K), lambda i, j: (i, 0)),
                pl.BlockSpec((K, tn), lambda i, j: (0, j)),
                pl.BlockSpec((1, tn), lambda i, j: (0, j)),
            ],
            out_specs=pl.BlockSpec((tm, tn), lambda i, j: (i, j)),
        ),
        compiler_params=pltpu.CompilerParams(
            dimension_semantics=("parallel", "parallel"),
            vmem_limit_bytes=int(min(64 << 20, max(32 << 20, 4 * vmem_need)))),
        cost_estimate=cost,
    )(x, w, b)


# ----------------------------------------------------------------------------
# Encoder LSTM (recurrence only), time-major gates [T, B, 4H], with the
# per-batch topic contribution added in-kernel and the fused mu/logvar/z
# reparameterization in the final grid step.
# ----------------------------------------------------------------------------
def encoder_lstm_reparam_pallas(gates, topic_gates, whh_t, wml_t, bml, eps):
    T, B, G = gates.shape
    H = whh_t.shape[0]
    L2 = wml_t.shape[1]
    L = L2 // 2
    TT = _pick_tt(T, bytes_per_step=B * G * gates.dtype.itemsize)

    def kernel(g_ref, tg_ref, whh_ref, wml_ref, bml_ref, eps_ref,
               mu_ref, lv_ref, z_ref, h_scr, c_scr):
        tblk = pl.program_id(0)

        @pl.when(tblk == 0)
        def _():
            h_scr[...] = jnp.zeros_like(h_scr)
            c_scr[...] = jnp.zeros_like(c_scr)

        whh = whh_ref[...]
        tg = tg_ref[...]

        def step(tt, carry):
            h, c = carry
            gt = (g_ref[tt].astype(jnp.float32) + tg
                  + jnp.dot(h, whh, preferred_element_type=jnp.float32))
            i = jax.nn.sigmoid(gt[:, 0 * H:1 * H])
            f = jax.nn.sigmoid(gt[:, 1 * H:2 * H])
            g = jnp.tanh(gt[:, 2 * H:3 * H])
            o = jax.nn.sigmoid(gt[:, 3 * H:4 * H])
            c = f * c + i * g
            h = o * jnp.tanh(c)
            return h, c

        h, c = lax.fori_loop(0, TT, step, (h_scr[...], c_scr[...]), unroll=True)
        h_scr[...] = h
        c_scr[...] = c

        @pl.when(tblk == pl.num_programs(0) - 1)
        def _():
            ml = jnp.dot(h, wml_ref[...],
                         preferred_element_type=jnp.float32) + bml_ref[...]
            mu = ml[:, :L]
            lv = ml[:, L:]
            mu_ref[...] = mu
            lv_ref[...] = lv
            z_ref[...] = mu + eps_ref[...] * jnp.exp(0.5 * lv)

    grid_spec = pltpu.PrefetchScalarGridSpec(
        num_scalar_prefetch=0,
        grid=(T // TT,),
        in_specs=[
            pl.BlockSpec((TT, B, G), lambda t: (t, 0, 0)),   # time-major gates
            pl.BlockSpec((B, G), lambda t: (0, 0)),          # topic @ W_k
            pl.BlockSpec((H, G), lambda t: (0, 0)),
            pl.BlockSpec((H, L2), lambda t: (0, 0)),
            pl.BlockSpec((1, L2), lambda t: (0, 0)),
            pl.BlockSpec((B, L), lambda t: (0, 0)),
        ],
        out_specs=[
            pl.BlockSpec((B, L), lambda t: (0, 0)),
            pl.BlockSpec((B, L), lambda t: (0, 0)),
            pl.BlockSpec((B, L), lambda t: (0, 0)),
        ],
        scratch_shapes=[pltpu.VMEM((B, H), jnp.float32),
                        pltpu.VMEM((B, H), jnp.float32)],
    )
    return pl.pallas_call(
        kernel,
        out_shape=(jax.ShapeDtypeStruct((B, L), jnp.float32),
                   jax.ShapeDtypeStruct((B, L), jnp.float32),
                   jax.ShapeDtypeStruct((B, L), jnp.float32)),
        grid_spec=grid_spec,
        compiler_params=pltpu.CompilerParams(dimension_semantics=("arbitrary",)),
    )(gates, topic_gates, whh_t, wml_t, bml, eps)


# ----------------------------------------------------------------------------
# Decoder LSTM (recurrence only), time-major gates [T, B, 4H].  h0 =
# tanh((z||topic) @ W_l2h + b) is fused into the first grid step.  Hidden
# states are emitted time-major [T, B, H] (full-slab lane-dense stores).
# ----------------------------------------------------------------------------
def decoder_lstm_pallas(z_cat, wl2h_t, bl2h, gates, whh_t, *, hs_dtype=jnp.bfloat16):
    T, B, G = gates.shape
    H = whh_t.shape[0]
    ZC = z_cat.shape[1]
    TT = _pick_tt(T, bytes_per_step=B * G * gates.dtype.itemsize
                                    + B * H * jnp.dtype(hs_dtype).itemsize)

    def kernel(zc_ref, wl2h_ref, bl2h_ref, g_ref, whh_ref,
               hs_ref, h_scr, c_scr):
        tblk = pl.program_id(0)

        @pl.when(tblk == 0)
        def _():
            h_scr[...] = jnp.tanh(
                jnp.dot(zc_ref[...], wl2h_ref[...],
                        preferred_element_type=jnp.float32) + bl2h_ref[...])
            c_scr[...] = jnp.zeros_like(c_scr)

        whh = whh_ref[...]

        def step(tt, carry):
            h, c = carry
            gt = (g_ref[tt].astype(jnp.float32)
                  + jnp.dot(h, whh, preferred_element_type=jnp.float32))
            i = jax.nn.sigmoid(gt[:, 0 * H:1 * H])
            f = jax.nn.sigmoid(gt[:, 1 * H:2 * H])
            g = jnp.tanh(gt[:, 2 * H:3 * H])
            o = jax.nn.sigmoid(gt[:, 3 * H:4 * H])
            c = f * c + i * g
            h = o * jnp.tanh(c)
            hs_ref[tt] = h.astype(hs_ref.dtype)
            return h, c

        h, c = lax.fori_loop(0, TT, step, (h_scr[...], c_scr[...]), unroll=True)
        h_scr[...] = h
        c_scr[...] = c

    grid_spec = pltpu.PrefetchScalarGridSpec(
        num_scalar_prefetch=0,
        grid=(T // TT,),
        in_specs=[
            pl.BlockSpec((B, ZC), lambda t: (0, 0)),
            pl.BlockSpec((ZC, H), lambda t: (0, 0)),
            pl.BlockSpec((1, H), lambda t: (0, 0)),
            pl.BlockSpec((TT, B, G), lambda t: (t, 0, 0)),   # time-major gates
            pl.BlockSpec((H, G), lambda t: (0, 0)),
        ],
        out_specs=pl.BlockSpec((TT, B, H), lambda t: (t, 0, 0)),
        scratch_shapes=[pltpu.VMEM((B, H), jnp.float32),
                        pltpu.VMEM((B, H), jnp.float32)],
    )
    return pl.pallas_call(
        kernel,
        out_shape=jax.ShapeDtypeStruct((T, B, H), hs_dtype),
        grid_spec=grid_spec,
        compiler_params=pltpu.CompilerParams(dimension_semantics=("arbitrary",)),
    )(z_cat, wl2h_t, bl2h, gates, whh_t)


# ----------------------------------------------------------------------------
# Full TopicGuidedVAE forward (takes "prepared" params: bf16 copies of big
# streamed operands, fused mu/logvar weight, split enc input weight).
# ----------------------------------------------------------------------------
def topic_guided_vae_forward(prep, x_tokens, topic_vec, eps):
    B, T = x_tokens.shape
    H = prep["enc_whh_t"].shape[0]
    V = prep["wout_bf"].shape[1]
    E = prep["enc_emb_bf"].shape[1]

    x_tm = x_tokens.T                                            # [T, B]

    # ---- Encoder ------------------------------------------------------------
    enc_emb = prep["enc_emb_bf"][x_tm]                           # [T, B, E] bf16
    enc_gates = matmul_bias_pallas(
        enc_emb.reshape(T * B, E), prep["enc_we_bf"], prep["enc_b"],
        out_dtype=jnp.bfloat16).reshape(T, B, 4 * H)             # time-major
    # topic contribution folded per batch row (added inside the LSTM kernel).
    topic_gates = jnp.dot(topic_vec, prep["enc_wk_t"],
                          preferred_element_type=jnp.float32)    # [B, 4H]
    mu, logvar, z = encoder_lstm_reparam_pallas(
        enc_gates, topic_gates, prep["enc_whh_t"],
        prep["wml_t"], prep["bml"], eps)

    # ---- Decoder ------------------------------------------------------------
    z_cat = jnp.concatenate([z, topic_vec], axis=1)              # [B, L+K]
    dec_emb = prep["dec_emb_bf"][x_tm]                           # [T, B, E] bf16
    dec_gates = matmul_bias_pallas(
        dec_emb.reshape(T * B, E), prep["dec_wih_bf"], prep["dec_b"],
        out_dtype=jnp.bfloat16).reshape(T, B, 4 * H)
    hs_tm = decoder_lstm_pallas(z_cat, prep["dec_wl2h_t"], prep["dec_bl2h"],
                                dec_gates, prep["dec_whh_t"])    # [T, B, H] bf16
    # Cheap [T,B,H]->[B,T,H] transpose so the big logits tensor is batch-major.
    hs = jnp.transpose(hs_tm, (1, 0, 2)).reshape(B * T, H)
    logits = matmul_bias_pallas(hs, prep["wout_bf"], prep["bout"],
                                out_dtype=jnp.float32).reshape(B, T, V)
    return logits, mu, logvar


# ----------------------------------------------------------------------------
# Pure-JAX reference (same math, lax.scan LSTM) for a correctness check.  Uses
# the same (bf16-quantized) weights the kernels use so the comparison only
# measures activation rounding.
# ----------------------------------------------------------------------------
def reference_forward(prep, x_tokens, topic_vec, eps):
    B, T = x_tokens.shape
    H = prep["enc_whh_t"].shape[0]
    L = prep["wml_t"].shape[1] // 2
    K = topic_vec.shape[1]
    f32 = lambda a: a.astype(jnp.float32)

    def run_lstm(x_tbd, wih_t, whh_t, b, h0, c0):
        def step(carry, x_t):
            h, c = carry
            gts = x_t @ wih_t + h @ whh_t + b
            i = jax.nn.sigmoid(gts[:, 0 * H:1 * H])
            f = jax.nn.sigmoid(gts[:, 1 * H:2 * H])
            g = jnp.tanh(gts[:, 2 * H:3 * H])
            o = jax.nn.sigmoid(gts[:, 3 * H:4 * H])
            c = f * c + i * g
            h = o * jnp.tanh(c)
            return (h, c), h
        (h_n, _), hs = lax.scan(step, (h0, c0), x_tbd)
        return h_n, hs

    enc_wih_t = jnp.concatenate([f32(prep["enc_we_bf"]), prep["enc_wk_t"]], axis=0)
    enc_emb = f32(prep["enc_emb_bf"])[x_tokens]                  # [B, T, E]
    topic_exp = jnp.broadcast_to(topic_vec[:, None, :], (B, T, K))
    enc_in_t = jnp.transpose(jnp.concatenate([enc_emb, topic_exp], -1), (1, 0, 2))
    zeros = jnp.zeros((B, H), jnp.float32)
    h_n, _ = run_lstm(enc_in_t, enc_wih_t, prep["enc_whh_t"], prep["enc_b"],
                      zeros, zeros)
    ml = h_n @ prep["wml_t"] + prep["bml"]
    mu, logvar = ml[:, :L], ml[:, L:]
    z = mu + eps * jnp.exp(0.5 * logvar)
    z_cat = jnp.concatenate([z, topic_vec], axis=1)
    h0 = jnp.tanh(z_cat @ prep["dec_wl2h_t"] + prep["dec_bl2h"])
    dec_in_t = jnp.transpose(f32(prep["dec_emb_bf"])[x_tokens], (1, 0, 2))
    _, hs = run_lstm(dec_in_t, f32(prep["dec_wih_bf"]), prep["dec_whh_t"],
                     prep["dec_b"], h0, zeros)
    logits = jnp.transpose(hs @ f32(prep["wout_bf"]) + prep["bout"], (1, 0, 2))
    return logits, mu, logvar


# ----------------------------------------------------------------------------
# Parameter init (shapes from the nn.Module __init__) + one-time preparation:
# weights pre-transposed [in, out]; LSTM biases b_ih + b_hh folded; big
# streamed operands copied to bf16; mu/logvar projections fused.
# ----------------------------------------------------------------------------
def init_params(key, V, E, H, L, K):
    names_shapes = [
        ("enc_emb", (V, E)),
        ("enc_wih_t", (E + K, 4 * H)), ("enc_whh_t", (H, 4 * H)), ("enc_b", (1, 4 * H)),
        ("wmu_t", (H, L)), ("bmu", (1, L)),
        ("wlv_t", (H, L)), ("blv", (1, L)),
        ("dec_wl2h_t", (L + K, H)), ("dec_bl2h", (1, H)),
        ("dec_emb", (V, E)),
        ("dec_wih_t", (E, 4 * H)), ("dec_whh_t", (H, 4 * H)), ("dec_b", (1, 4 * H)),
        ("wout_t", (H, V)), ("bout", (1, V)),
    ]
    keys = jax.random.split(key, len(names_shapes))
    return {name: 0.1 * jax.random.normal(k, shape, dtype=jnp.float32)
            for k, (name, shape) in zip(keys, names_shapes)}


def prepare_params(p):
    E = p["enc_emb"].shape[1]
    bf = lambda a: a.astype(jnp.bfloat16)
    return {
        # bf16 copies of the big streamed operands (done once, not per call).
        "enc_emb_bf": bf(p["enc_emb"]),
        "dec_emb_bf": bf(p["dec_emb"]),
        "enc_we_bf": bf(p["enc_wih_t"][:E]),      # embedding part of enc W_ih
        "enc_wk_t": p["enc_wih_t"][E:],           # topic part, small, f32
        "dec_wih_bf": bf(p["dec_wih_t"]),
        "wout_bf": bf(p["wout_t"]),
        # recurrence / small weights stay f32.
        "enc_whh_t": p["enc_whh_t"], "enc_b": p["enc_b"],
        "dec_whh_t": p["dec_whh_t"], "dec_b": p["dec_b"],
        "dec_wl2h_t": p["dec_wl2h_t"], "dec_bl2h": p["dec_bl2h"],
        "bout": p["bout"],
        # fused mu/logvar projection -> single [H, 2L] matmul in the last step.
        "wml_t": jnp.concatenate([p["wmu_t"], p["wlv_t"]], axis=1),
        "bml": jnp.concatenate([p["bmu"], p["blv"]], axis=1),
    }


if __name__ == "__main__":
    V, E, H, L, K = 32, 16, 32, 8, 4   # vocab, embed, hidden, latent, topics
    B, T = 2, 8

    root = jax.random.PRNGKey(0)
    kp, kx, kt, ke = jax.random.split(root, 4)
    params = init_params(kp, V, E, H, L, K)
    prep = prepare_params(params)
    x = jax.random.randint(kx, (B, T), 0, V, dtype=jnp.int32)
    topic_vec = jax.nn.softmax(jax.random.normal(kt, (B, K), jnp.float32), axis=-1)
    # torch.randn_like(std) -> explicit eps input so the kernel is deterministic.
    eps = jax.random.normal(ke, (B, L), jnp.float32)

    fwd = jax.jit(topic_guided_vae_forward)
    logits, mu, logvar = fwd(prep, x, topic_vec, eps)
    jax.block_until_ready((logits, mu, logvar))

    ref_logits, ref_mu, ref_lv = reference_forward(prep, x, topic_vec, eps)
    assert logits.shape == (B, T, V) and mu.shape == (B, L) and logvar.shape == (B, L)
    for got, ref in ((logits, ref_logits), (mu, ref_mu), (logvar, ref_lv)):
        err = float(jnp.max(jnp.abs(got.astype(jnp.float32) - ref)))
        assert err < 2e-2, err

    print("KERNEL_OK")
</pallas_src>

<mosaic_0001>
module attributes {stable_mosaic.version = 11 : i64} {
  func.func @_matmul_bias_kernel(%arg0: i32, %arg1: i32, %arg2: memref<16x16xbf16, #tpu.memory_space<vmem>>, %arg3: memref<16x128xbf16, #tpu.memory_space<vmem>>, %arg4: memref<1x128xf32, #tpu.memory_space<vmem>>, %arg5: memref<16x128xbf16, #tpu.memory_space<vmem>>) attributes {dimension_semantics = [#tpu.dimension_semantics<parallel>, #tpu.dimension_semantics<parallel>], iteration_bounds = array<i64: 1, 1>, scalar_prefetch = 0 : i64, scratch_operands = 0 : i64, tpu.core_type = #tpu.core_type<tc>, window_params = [{transform_indices = @transform_0, window_bounds = array<i64: 16, 16>}, {transform_indices = @transform_1, window_bounds = array<i64: 16, 128>}, {transform_indices = @transform_2, window_bounds = array<i64: 1, 128>}, {transform_indices = @transform_3, window_bounds = array<i64: 16, 128>}]} {
    %c0 = arith.constant 0 : index
    %c0_0 = arith.constant 0 : index
    %0 = vector.load %arg2[%c0, %c0_0] : memref<16x16xbf16, #tpu.memory_space<vmem>>, vector<16x16xbf16>
    %c0_1 = arith.constant 0 : index
    %c0_2 = arith.constant 0 : index
    %1 = vector.load %arg3[%c0_1, %c0_2] : memref<16x128xbf16, #tpu.memory_space<vmem>>, vector<16x128xbf16>
    %cst = arith.constant dense<0.000000e+00> : vector<16x128xf32>
    %2 = tpu.matmul %0, %1, %cst {dimension_numbers = #tpu.dot_dimension_numbers<[1], [0], [0], [1], [0, 0, 1, 1], [], []>} : vector<16x16xbf16>, vector<16x128xbf16>, vector<16x128xf32> -> vector<16x128xf32>
    %c0_3 = arith.constant 0 : index
    %c0_4 = arith.constant 0 : index
    %3 = vector.load %arg4[%c0_3, %c0_4] : memref<1x128xf32, #tpu.memory_space<vmem>>, vector<1x128xf32>
    %4 = vector.broadcast %3 : vector<1x128xf32> to vector<16x128xf32>
    %5 = arith.addf %2, %4 : vector<16x128xf32>
    %6 = arith.truncf %5 : vector<16x128xf32> to vector<16x128xbf16>
    %c0_5 = arith.constant 0 : index
    %c0_6 = arith.constant 0 : index
    %7 = vector.load %arg5[%c0_5, %c0_6] : memref<16x128xbf16, #tpu.memory_space<vmem>>, vector<16x128xbf16>
    tpu.vector_store %arg5[%c0_5, %c0_6], %6 {strides = array<i32>} : memref<16x128xbf16, #tpu.memory_space<vmem>>, vector<16x128xbf16>,
    return
  }
  func.func @transform_0(%arg0: i32, %arg1: i32) -> (i32, i32) {
    %c0_i32 = arith.constant 0 : i32
    %c0_i32_0 = arith.constant 0 : i32
    return %arg0, %c0_i32 : i32, i32
  }
  func.func @transform_1(%arg0: i32, %arg1: i32) -> (i32, i32) {
    %c0_i32 = arith.constant 0 : i32
    %c0_i32_0 = arith.constant 0 : i32
    return %c0_i32, %arg1 : i32, i32
  }
  func.func @transform_2(%arg0: i32, %arg1: i32) -> (i32, i32) {
    %c0_i32 = arith.constant 0 : i32
    %c0_i32_0 = arith.constant 0 : i32
    return %c0_i32, %arg1 : i32, i32
  }
  func.func @transform_3(%arg0: i32, %arg1: i32) -> (i32, i32) {
    %c0_i32 = arith.constant 0 : i32
    return %arg0, %arg1 : i32, i32
  }
}

module attributes {stable_mosaic.version = 11 : i64} {
  func.func @_matmul_bias_kernel(%arg0: i32, %arg1: i32, %arg2: memref<16x32xbf16, #tpu.memory_space<vmem>>, %arg3: memref<32x32xbf16, #tpu.memory_space<vmem>>, %arg4: memref<1x32xf32, #tpu.memory_space<vmem>>, %arg5: memref<16x32xf32, #tpu.memory_space<vmem>>) attributes {dimension_semantics = [#tpu.dimension_semantics<parallel>, #tpu.dimension_semantics<parallel>], iteration_bounds = array<i64: 1, 1>, scalar_prefetch = 0 : i64, scratch_operands = 0 : i64, tpu.core_type = #tpu.core_type<tc>, window_params = [{transform_indices = @transform_0, window_bounds = array<i64: 16, 32>}, {transform_indices = @transform_1, window_bounds = array<i64: 32, 32>}, {transform_indices = @transform_2, window_bounds = array<i64: 1, 32>}, {transform_indices = @transform_3, window_bounds = array<i64: 16, 32>}]} {
    %c0 = arith.constant 0 : index
    %c0_0 = arith.constant 0 : index
    %0 = vector.load %arg2[%c0, %c0_0] : memref<16x32xbf16, #tpu.memory_space<vmem>>, vector<16x32xbf16>
    %c0_1 = arith.constant 0 : index
    %c0_2 = arith.constant 0 : index
    %1 = vector.load %arg3[%c0_1, %c0_2] : memref<32x32xbf16, #tpu.memory_space<vmem>>, vector<32x32xbf16>
    %cst = arith.constant dense<0.000000e+00> : vector<16x32xf32>
    %2 = tpu.matmul %0, %1, %cst {dimension_numbers = #tpu.dot_dimension_numbers<[1], [0], [0], [1], [0, 0, 1, 1], [], []>} : vector<16x32xbf16>, vector<32x32xbf16>, vector<16x32xf32> -> vector<16x32xf32>
    %c0_3 = arith.constant 0 : index
    %c0_4 = arith.constant 0 : index
    %3 = vector.load %arg4[%c0_3, %c0_4] : memref<1x32xf32, #tpu.memory_space<vmem>>, vector<1x32xf32>
    %4 = vector.broadcast %3 : vector<1x32xf32> to vector<16x32xf32>
    %5 = arith.addf %2, %4 : vector<16x32xf32>
    %c0_5 = arith.constant 0 : index
    %c0_6 = arith.constant 0 : index
    %6 = vector.load %arg5[%c0_5, %c0_6] : memref<16x32xf32, #tpu.memory_space<vmem>>, vector<16x32xf32>
    tpu.vector_store %arg5[%c0_5, %c0_6], %5 {strides = array<i32>} : memref<16x32xf32, #tpu.memory_space<vmem>>, vector<16x32xf32>,
    return
  }
  func.func @transform_0(%arg0: i32, %arg1: i32) -> (i32, i32) {
    %c0_i32 = arith.constant 0 : i32
    %c0_i32_0 = arith.constant 0 : i32
    return %arg0, %c0_i32 : i32, i32
  }
  func.func @transform_1(%arg0: i32, %arg1: i32) -> (i32, i32) {
    %c0_i32 = arith.constant 0 : i32
    %c0_i32_0 = arith.constant 0 : i32
    return %c0_i32, %arg1 : i32, i32
  }
  func.func @transform_2(%arg0: i32, %arg1: i32) -> (i32, i32) {
    %c0_i32 = arith.constant 0 : i32
    %c0_i32_0 = arith.constant 0 : i32
    return %c0_i32, %arg1 : i32, i32
  }
  func.func @transform_3(%arg0: i32, %arg1: i32) -> (i32, i32) {
    %c0_i32 = arith.constant 0 : i32
    return %arg0, %arg1 : i32, i32
  }
}

module attributes {stable_mosaic.version = 11 : i64} {
  func.func @kernel(%arg0: i32, %arg1: memref<8x2x128xbf16, #tpu.memory_space<vmem>>, %arg2: memref<2x128xf32, #tpu.memory_space<vmem>>, %arg3: memref<32x128xf32, #tpu.memory_space<vmem>>, %arg4: memref<32x16xf32, #tpu.memory_space<vmem>>, %arg5: memref<1x16xf32, #tpu.memory_space<vmem>>, %arg6: memref<2x8xf32, #tpu.memory_space<vmem>>, %arg7: memref<2x8xf32, #tpu.memory_space<vmem>>, %arg8: memref<2x8xf32, #tpu.memory_space<vmem>>, %arg9: memref<2x8xf32, #tpu.memory_space<vmem>>, %arg10: memref<2x32xf32, #tpu.memory_space<vmem>>, %arg11: memref<2x32xf32, #tpu.memory_space<vmem>>) attributes {dimension_semantics = [#tpu.dimension_semantics<arbitrary>], iteration_bounds = array<i64: 1>, scalar_prefetch = 0 : i64, scratch_operands = 2 : i64, tpu.core_type = #tpu.core_type<tc>, window_params = [{transform_indices = @transform_0, window_bounds = array<i64: 8, 2, 128>}, {pipeline_mode = #tpu.pipeline_mode<synchronous>, transform_indices = @transform_1, window_bounds = array<i64: 2, 128>}, {pipeline_mode = #tpu.pipeline_mode<synchronous>, transform_indices = @transform_2, window_bounds = array<i64: 32, 128>}, {pipeline_mode = #tpu.pipeline_mode<synchronous>, transform_indices = @transform_3, window_bounds = array<i64: 32, 16>}, {pipeline_mode = #tpu.pipeline_mode<synchronous>, transform_indices = @transform_4, window_bounds = array<i64: 1, 16>}, {pipeline_mode = #tpu.pipeline_mode<synchronous>, transform_indices = @transform_5, window_bounds = array<i64: 2, 8>}, {pipeline_mode = #tpu.pipeline_mode<synchronous>, transform_indices = @transform_6, window_bounds = array<i64: 2, 8>}, {pipeline_mode = #tpu.pipeline_mode<synchronous>, transform_indices = @transform_7, window_bounds = array<i64: 2, 8>}, {pipeline_mode = #tpu.pipeline_mode<synchronous>, transform_indices = @transform_8, window_bounds = array<i64: 2, 8>}]} {
    %c0_i32 = arith.constant 0 : i32
    %0 = arith.cmpi eq, %arg0, %c0_i32 : i32
    %1 = arith.extui %0 : i1 to i32
    %c0_i32_0 = arith.constant 0 : i32
    %2 = arith.cmpi ne, %1, %c0_i32_0 : i32
    scf.if %2 {
      %cst_62 = arith.constant 0.000000e+00 : f32
      %268 = vector.broadcast %cst_62 : f32 to vector<2x32xf32>
      %c0_63 = arith.constant 0 : index
      %c0_64 = arith.constant 0 : index
      %269 = vector.load %arg10[%c0_63, %c0_64] : memref<2x32xf32, #tpu.memory_space<vmem>>, vector<2x32xf32>
      tpu.vector_store %arg10[%c0_63, %c0_64], %268 {strides = array<i32>} : memref<2x32xf32, #tpu.memory_space<vmem>>, vector<2x32xf32>,
      %cst_65 = arith.constant 0.000000e+00 : f32
      %270 = vector.broadcast %cst_65 : f32 to vector<2x32xf32>
      %c0_66 = arith.constant 0 : index
      %c0_67 = arith.constant 0 : index
      %271 = vector.load %arg11[%c0_66, %c0_67] : memref<2x32xf32, #tpu.memory_space<vmem>>, vector<2x32xf32>
      tpu.vector_store %arg11[%c0_66, %c0_67], %270 {strides = array<i32>} : memref<2x32xf32, #tpu.memory_space<vmem>>, vector<2x32xf32>,
    } else {
    }
    %c0 = arith.constant 0 : index
    %c0_1 = arith.constant 0 : index
    %3 = vector.load %arg3[%c0, %c0_1] : memref<32x128xf32, #tpu.memory_space<vmem>>, vector<32x128xf32>
    %c0_2 = arith.constant 0 : index
    %c0_3 = arith.constant 0 : index
    %4 = vector.load %arg2[%c0_2, %c0_3] : memref<2x128xf32, #tpu.memory_space<vmem>>, vector<2x128xf32>
    %c0_4 = arith.constant 0 : index
    %c0_5 = arith.constant 0 : index
    %5 = vector.load %arg10[%c0_4, %c0_5] : memref<2x32xf32, #tpu.memory_space<vmem>>, vector<2x32xf32>
    %c0_6 = arith.constant 0 : index
    %c0_7 = arith.constant 0 : index
    %6 = vector.load %arg11[%c0_6, %c0_7] : memref<2x32xf32, #tpu.memory_space<vmem>>, vector<2x32xf32>
    %c0_i32_8 = arith.constant 0 : i32
    %7 = arith.index_cast %c0_i32_8 : i32 to index
    %c0_9 = arith.constant 0 : index
    %c0_10 = arith.constant 0 : index
    %8 = vector.load %arg1[%7, %c0_9, %c0_10] : memref<8x2x128xbf16, #tpu.memory_space<vmem>>, vector<1x2x128xbf16>
    %9 = vector.shape_cast %8 : vector<1x2x128xbf16> to vector<2x128xbf16>
    %10 = arith.extf %9 : vector<2x128xbf16> to vector<2x128xf32>
    %11 = arith.addf %10, %4 : vector<2x128xf32>
    %cst = arith.constant dense<0.000000e+00> : vector<2x128xf32>
    %12 = tpu.matmul %5, %3, %cst {dimension_numbers = #tpu.dot_dimension_numbers<[1], [0], [0], [1], [0, 0, 1, 1], [], []>} : vector<2x32xf32>, vector<32x128xf32>, vector<2x128xf32> -> vector<2x128xf32>
    %13 = arith.addf %11, %12 : vector<2x128xf32>
    %14 = vector.extract_strided_slice %13 {offsets = [0, 0], sizes = [2, 32], strides = [1, 1]} : vector<2x128xf32> to vector<2x32xf32>
    %15 = arith.negf %14 : vector<2x32xf32>
    %16 = math.exp %15 : vector<2x32xf32>
    %cst_11 = arith.constant 1.000000e+00 : f32
    %17 = vector.broadcast %cst_11 : f32 to vector<2x32xf32>
    %18 = arith.addf %17, %16 : vector<2x32xf32>
    %19 = arith.divf %17, %18 : vector<2x32xf32>
    %20 = vector.extract_strided_slice %13 {offsets = [0, 32], sizes = [2, 32], strides = [1, 1]} : vector<2x128xf32> to vector<2x32xf32>
    %21 = arith.negf %20 : vector<2x32xf32>
    %22 = math.exp %21 : vector<2x32xf32>
    %cst_12 = arith.constant 1.000000e+00 : f32
    %23 = vector.broadcast %cst_12 : f32 to vector<2x32xf32>
    %24 = arith.addf %23, %22 : vector<2x32xf32>
    %25 = arith.divf %23, %24 : vector<2x32xf32>
    %26 = vector.extract_strided_slice %13 {offsets = [0, 64], sizes = [2, 32], strides = [1, 1]} : vector<2x128xf32> to vector<2x32xf32>
    %27 = math.tanh %26 : vector<2x32xf32>
    %28 = vector.extract_strided_slice %13 {offsets = [0, 96], sizes = [2, 32], strides = [1, 1]} : vector<2x128xf32> to vector<2x32xf32>
    %29 = arith.negf %28 : vector<2x32xf32>
    %30 = math.exp %29 : vector<2x32xf32>
    %cst_13 = arith.constant 1.000000e+00 : f32
    %31 = vector.broadcast %cst_13 : f32 to vector<2x32xf32>
    %32 = arith.addf %31, %30 : vector<2x32xf32>
    %33 = arith.divf %31, %32 : vector<2x32xf32>
    %34 = arith.mulf %25, %6 : vector<2x32xf32>
    %35 = arith.mulf %19, %27 : vector<2x32xf32>
    %36 = arith.addf %34, %35 : vector<2x32xf32>
    %37 = math.tanh %36 : vector<2x32xf32>
    %38 = arith.mulf %33, %37 : vector<2x32xf32>
    %c1_i32 = arith.constant 1 : i32
    %39 = arith.index_cast %c1_i32 : i32 to index
    %c0_14 = arith.constant 0 : index
    %c0_15 = arith.constant 0 : index
    %40 = vector.load %arg1[%39, %c0_14, %c0_15] : memref<8x2x128xbf16, #tpu.memory_space<vmem>>, vector<1x2x128xbf16>
    %41 = vector.shape_cast %40 : vector<1x2x128xbf16> to vector<2x128xbf16>
    %42 = arith.extf %41 : vector<2x128xbf16> to vector<2x128xf32>
    %43 = arith.addf %42, %4 : vector<2x128xf32>
    %cst_16 = arith.constant dense<0.000000e+00> : vector<2x128xf32>
    %44 = tpu.matmul %38, %3, %cst_16 {dimension_numbers = #tpu.dot_dimension_numbers<[1], [0], [0], [1], [0, 0, 1, 1], [], []>} : vector<2x32xf32>, vector<32x128xf32>, vector<2x128xf32> -> vector<2x128xf32>
    %45 = arith.addf %43, %44 : vector<2x128xf32>
    %46 = vector.extract_strided_slice %45 {offsets = [0, 0], sizes = [2, 32], strides = [1, 1]} : vector<2x128xf32> to vector<2x32xf32>
    %47 = arith.negf %46 : vector<2x32xf32>
    %48 = math.exp %47 : vector<2x32xf32>
    %cst_17 = arith.constant 1.000000e+00 : f32
    %49 = vector.broadcast %cst_17 : f32 to vector<2x32xf32>
    %50 = arith.addf %49, %48 : vector<2x32xf32>
    %51 = arith.divf %49, %50 : vector<2x32xf32>
    %52 = vector.extract_strided_slice %45 {offsets = [0, 32], sizes = [2, 32], strides = [1, 1]} : vector<2x128xf32> to vector<2x32xf32>
    %53 = arith.negf %52 : vector<2x32xf32>
    %54 = math.exp %53 : vector<2x32xf32>
    %cst_18 = arith.constant 1.000000e+00 : f32
    %55 = vector.broadcast %cst_18 : f32 to vector<2x32xf32>
    %56 = arith.addf %55, %54 : vector<2x32xf32>
    %57 = arith.divf %55, %56 : vector<2x32xf32>
    %58 = vector.extract_strided_slice %45 {offsets = [0, 64], sizes = [2, 32], strides = [1, 1]} : vector<2x128xf32> to vector<2x32xf32>
    %59 = math.tanh %58 : vector<2x32xf32>
    %60 = vector.extract_strided_slice %45 {offsets = [0, 96], sizes = [2, 32], strides = [1, 1]} : vector<2x128xf32> to vector<2x32xf32>
    %61 = arith.negf %60 : vector<2x32xf32>
    %62 = math.exp %61 : vector<2x32xf32>
    %cst_19 = arith.constant 1.000000e+00 : f32
    %63 = vector.broadcast %cst_19 : f32 to vector<2x32xf32>
    %64 = arith.addf %63, %62 : vector<2x32xf32>
    %65 = arith.divf %63, %64 : vector<2x32xf32>
    %66 = arith.mulf %57, %36 : vector<2x32xf32>
    %67 = arith.mulf %51, %59 : vector<2x32xf32>
    %68 = arith.addf %66, %67 : vector<2x32xf32>
    %69 = math.tanh %68 : vector<2x32xf32>
    %70 = arith.mulf %65, %69 : vector<2x32xf32>
    %c2_i32 = arith.constant 2 : i32
    %71 = arith.index_cast %c2_i32 : i32 to index
    %c0_20 = arith.constant 0 : index
    %c0_21 = arith.constant 0 : index
    %72 = vector.load %arg1[%71, %c0_20, %c0_21] : memref<8x2x128xbf16, #tpu.memory_space<vmem>>, vector<1x2x128xbf16>
    %73 = vector.shape_cast %72 : vector<1x2x128xbf16> to vector<2x128xbf16>
    %74 = arith.extf %73 : vector<2x128xbf16> to vector<2x128xf32>
    %75 = arith.addf %74, %4 : vector<2x128xf32>
    %cst_22 = arith.constant dense<0.000000e+00> : vector<2x128xf32>
    %76 = tpu.matmul %70, %3, %cst_22 {dimension_numbers = #tpu.dot_dimension_numbers<[1], [0], [0], [1], [0, 0, 1, 1], [], []>} : vector<2x32xf32>, vector<32x128xf32>, vector<2x128xf32> -> vector<2x128xf32>
    %77 = arith.addf %75, %76 : vector<2x128xf32>
    %78 = vector.extract_strided_slice %77 {offsets = [0, 0], sizes = [2, 32], strides = [1, 1]} : vector<2x128xf32> to vector<2x32xf32>
    %79 = arith.negf %78 : vector<2x32xf32>
    %80 = math.exp %79 : vector<2x32xf32>
    %cst_23 = arith.constant 1.000000e+00 : f32
    %81 = vector.broadcast %cst_23 : f32 to vector<2x32xf32>
    %82 = arith.addf %81, %80 : vector<2x32xf32>
    %83 = arith.divf %81, %82 : vector<2x32xf32>
    %84 = vector.extract_strided_slice %77 {offsets = [0, 32], sizes = [2, 32], strides = [1, 1]} : vector<2x128xf32> to vector<2x32xf32>
    %85 = arith.negf %84 : vector<2x32xf32>
    %86 = math.exp %85 : vector<2x32xf32>
    %cst_24 = arith.constant 1.000000e+00 : f32
    %87 = vector.broadcast %cst_24 : f32 to vector<2x32xf32>
    %88 = arith.addf %87, %86 : vector<2x32xf32>
    %89 = arith.divf %87, %88 : vector<2x32xf32>
    %90 = vector.extract_strided_slice %77 {offsets = [0, 64], sizes = [2, 32], strides = [1, 1]} : vector<2x128xf32> to vector<2x32xf32>
    %91 = math.tanh %90 : vector<2x32xf32>
    %92 = vector.extract_strided_slice %77 {offsets = [0, 96], sizes = [2, 32], strides = [1, 1]} : vector<2x128xf32> to vector<2x32xf32>
    %93 = arith.negf %92 : vector<2x32xf32>
    %94 = math.exp %93 : vector<2x32xf32>
    %cst_25 = arith.constant 1.000000e+00 : f32
    %95 = vector.broadcast %cst_25 : f32 to vector<2x32xf32>
    %96 = arith.addf %95, %94 : vector<2x32xf32>
    %97 = arith.divf %95, %96 : vector<2x32xf32>
    %98 = arith.mulf %89, %68 : vector<2x32xf32>
    %99 = arith.mulf %83, %91 : vector<2x32xf32>
    %100 = arith.addf %98, %99 : vector<2x32xf32>
    %101 = math.tanh %100 : vector<2x32xf32>
    %102 = arith.mulf %97, %101 : vector<2x32xf32>
    %c3_i32 = arith.constant 3 : i32
    %103 = arith.index_cast %c3_i32 : i32 to index
    %c0_26 = arith.constant 0 : index
    %c0_27 = arith.constant 0 : index
    %104 = vector.load %arg1[%103, %c0_26, %c0_27] : memref<8x2x128xbf16, #tpu.memory_space<vmem>>, vector<1x2x128xbf16>
    %105 = vector.shape_cast %104 : vector<1x2x128xbf16> to vector<2x128xbf16>
    %106 = arith.extf %105 : vector<2x128xbf16> to vector<2x128xf32>
    %107 = arith.addf %106, %4 : vector<2x128xf32>
    %cst_28 = arith.constant dense<0.000000e+00> : vector<2x128xf32>
    %108 = tpu.matmul %102, %3, %cst_28 {dimension_numbers = #tpu.dot_dimension_numbers<[1], [0], [0], [1], [0, 0, 1, 1], [], []>} : vector<2x32xf32>, vector<32x128xf32>, vector<2x128xf32> -> vector<2x128xf32>
    %109 = arith.addf %107, %108 : vector<2x128xf32>
    %110 = vector.extract_strided_slice %109 {offsets = [0, 0], sizes = [2, 32], strides = [1, 1]} : vector<2x128xf32> to vector<2x32xf32>
    %111 = arith.negf %110 : vector<2x32xf32>
    %112 = math.exp %111 : vector<2x32xf32>
    %cst_29 = arith.constant 1.000000e+00 : f32
    %113 = vector.broadcast %cst_29 : f32 to vector<2x32xf32>
    %114 = arith.addf %113, %112 : vector<2x32xf32>
    %115 = arith.divf %113, %114 : vector<2x32xf32>
    %116 = vector.extract_strided_slice %109 {offsets = [0, 32], sizes = [2, 32], strides = [1, 1]} : vector<2x128xf32> to vector<2x32xf32>
    %117 = arith.negf %116 : vector<2x32xf32>
    %118 = math.exp %117 : vector<2x32xf32>
    %cst_30 = arith.constant 1.000000e+00 : f32
    %119 = vector.broadcast %cst_30 : f32 to vector<2x32xf32>
    %120 = arith.addf %119, %118 : vector<2x32xf32>
    %121 = arith.divf %119, %120 : vector<2x32xf32>
    %122 = vector.extract_strided_slice %109 {offsets = [0, 64], sizes = [2, 32], strides = [1, 1]} : vector<2x128xf32> to vector<2x32xf32>
    %123 = math.tanh %122 : vector<2x32xf32>
    %124 = vector.extract_strided_slice %109 {offsets = [0, 96], sizes = [2, 32], strides = [1, 1]} : vector<2x128xf32> to vector<2x32xf32>
    %125 = arith.negf %124 : vector<2x32xf32>
    %126 = math.exp %125 : vector<2x32xf32>
    %cst_31 = arith.constant 1.000000e+00 : f32
    %127 = vector.broadcast %cst_31 : f32 to vector<2x32xf32>
    %128 = arith.addf %127, %126 : vector<2x32xf32>
    %129 = arith.divf %127, %128 : vector<2x32xf32>
    %130 = arith.mulf %121, %100 : vector<2x32xf32>
    %131 = arith.mulf %115, %123 : vector<2x32xf32>
    %132 = arith.addf %130, %131 : vector<2x32xf32>
    %133 = math.tanh %132 : vector<2x32xf32>
    %134 = arith.mulf %129, %133 : vector<2x32xf32>
    %c4_i32 = arith.constant 4 : i32
    %135 = arith.index_cast %c4_i32 : i32 to index
    %c0_32 = arith.constant 0 : index
    %c0_33 = arith.constant 0 : index
    %136 = vector.load %arg1[%135, %c0_32, %c0_33] : memref<8x2x128xbf16, #tpu.memory_space<vmem>>, vector<1x2x128xbf16>
    %137 = vector.shape_cast %136 : vector<1x2x128xbf16> to vector<2x128xbf16>
    %138 = arith.extf %137 : vector<2x128xbf16> to vector<2x128xf32>
    %139 = arith.addf %138, %4 : vector<2x128xf32>
    %cst_34 = arith.constant dense<0.000000e+00> : vector<2x128xf32>
    %140 = tpu.matmul %134, %3, %cst_34 {dimension_numbers = #tpu.dot_dimension_numbers<[1], [0], [0], [1], [0, 0, 1, 1], [], []>} : vector<2x32xf32>, vector<32x128xf32>, vector<2x128xf32> -> vector<2x128xf32>
    %141 = arith.addf %139, %140 : vector<2x128xf32>
    %142 = vector.extract_strided_slice %141 {offsets = [0, 0], sizes = [2, 32], strides = [1, 1]} : vector<2x128xf32> to vector<2x32xf32>
    %143 = arith.negf %142 : vector<2x32xf32>
    %144 = math.exp %143 : vector<2x32xf32>
    %cst_35 = arith.constant 1.000000e+00 : f32
    %145 = vector.broadcast %cst_35 : f32 to vector<2x32xf32>
    %146 = arith.addf %145, %144 : vector<2x32xf32>
    %147 = arith.divf %145, %146 : vector<2x32xf32>
    %148 = vector.extract_strided_slice %141 {offsets = [0, 32], sizes = [2, 32], strides = [1, 1]} : vector<2x128xf32> to vector<2x32xf32>
    %149 = arith.negf %148 : vector<2x32xf32>
    %150 = math.exp %149 : vector<2x32xf32>
    %cst_36 = arith.constant 1.000000e+00 : f32
    %151 = vector.broadcast %cst_36 : f32 to vector<2x32xf32>
    %152 = arith.addf %151, %150 : vector<2x32xf32>
    %153 = arith.divf %151, %152 : vector<2x32xf32>
    %154 = vector.extract_strided_slice %141 {offsets = [0, 64], sizes = [2, 32], strides = [1, 1]} : vector<2x128xf32> to vector<2x32xf32>
    %155 = math.tanh %154 : vector<2x32xf32>
    %156 = vector.extract_strided_slice %141 {offsets = [0, 96], sizes = [2, 32], strides = [1, 1]} : vector<2x128xf32> to vector<2x32xf32>
    %157 = arith.negf %156 : vector<2x32xf32>
    %158 = math.exp %157 : vector<2x32xf32>
    %cst_37 = arith.constant 1.000000e+00 : f32
    %159 = vector.broadcast %cst_37 : f32 to vector<2x32xf32>
    %160 = arith.addf %159, %158 : vector<2x32xf32>
    %161 = arith.divf %159, %160 : vector<2x32xf32>
    %162 = arith.mulf %153, %132 : vector<2x32xf32>
    %163 = arith.mulf %147, %155 : vector<2x32xf32>
    %164 = arith.addf %162, %163 : vector<2x32xf32>
    %165 = math.tanh %164 : vector<2x32xf32>
    %166 = arith.mulf %161, %165 : vector<2x32xf32>
    %c5_i32 = arith.constant 5 : i32
    %167 = arith.index_cast %c5_i32 : i32 to index
    %c0_38 = arith.constant 0 : index
    %c0_39 = arith.constant 0 : index
    %168 = vector.load %arg1[%167, %c0_38, %c0_39] : memref<8x2x128xbf16, #tpu.memory_space<vmem>>, vector<1x2x128xbf16>
    %169 = vector.shape_cast %168 : vector<1x2x128xbf16> to vector<2x128xbf16>
    %170 = arith.extf %169 : vector<2x128xbf16> to vector<2x128xf32>
    %171 = arith.addf %170, %4 : vector<2x128xf32>
    %cst_40 = arith.constant dense<0.000000e+00> : vector<2x128xf32>
    %172 = tpu.matmul %166, %3, %cst_40 {dimension_numbers = #tpu.dot_dimension_numbers<[1], [0], [0], [1], [0, 0, 1, 1], [], []>} : vector<2x32xf32>, vector<32x128xf32>, vector<2x128xf32> -> vector<2x128xf32>
    %173 = arith.addf %171, %172 : vector<2x128xf32>
    %174 = vector.extract_strided_slice %173 {offsets = [0, 0], sizes = [2, 32], strides = [1, 1]} : vector<2x128xf32> to vector<2x32xf32>
    %175 = arith.negf %174 : vector<2x32xf32>
    %176 = math.exp %175 : vector<2x32xf32>
    %cst_41 = arith.constant 1.000000e+00 : f32
    %177 = vector.broadcast %cst_41 : f32 to vector<2x32xf32>
    %178 = arith.addf %177, %176 : vector<2x32xf32>
    %179 = arith.divf %177, %178 : vector<2x32xf32>
    %180 = vector.extract_strided_slice %173 {offsets = [0, 32], sizes = [2, 32], strides = [1, 1]} : vector<2x128xf32> to vector<2x32xf32>
    %181 = arith.negf %180 : vector<2x32xf32>
    %182 = math.exp %181 : vector<2x32xf32>
    %cst_42 = arith.constant 1.000000e+00 : f32
    %183 = vector.broadcast %cst_42 : f32 to vector<2x32xf32>
    %184 = arith.addf %183, %182 : vector<2x32xf32>
    %185 = arith.divf %183, %184 : vector<2x32xf32>
    %186 = vector.extract_strided_slice %173 {offsets = [0, 64], sizes = [2, 32], strides = [1, 1]} : vector<2x128xf32> to vector<2x32xf32>
    %187 = math.tanh %186 : vector<2x32xf32>
    %188 = vector.extract_strided_slice %173 {offsets = [0, 96], sizes = [2, 32], strides = [1, 1]} : vector<2x128xf32> to vector<2x32xf32>
    %189 = arith.negf %188 : vector<2x32xf32>
    %190 = math.exp %189 : vector<2x32xf32>
    %cst_43 = arith.constant 1.000000e+00 : f32
    %191 = vector.broadcast %cst_43 : f32 to vector<2x32xf32>
    %192 = arith.addf %191, %190 : vector<2x32xf32>
    %193 = arith.divf %191, %192 : vector<2x32xf32>
    %194 = arith.mulf %185, %164 : vector<2x32xf32>
    %195 = arith.mulf %179, %187 : vector<2x32xf32>
    %196 = arith.addf %194, %195 : vector<2x32xf32>
    %197 = math.tanh %196 : vector<2x32xf32>
    %198 = arith.mulf %193, %197 : vector<2x32xf32>
    %c6_i32 = arith.constant 6 : i32
    %199 = arith.index_cast %c6_i32 : i32 to index
    %c0_44 = arith.constant 0 : index
    %c0_45 = arith.constant 0 : index
    %200 = vector.load %arg1[%199, %c0_44, %c0_45] : memref<8x2x128xbf16, #tpu.memory_space<vmem>>, vector<1x2x128xbf16>
    %201 = vector.shape_cast %200 : vector<1x2x128xbf16> to vector<2x128xbf16>
    %202 = arith.extf %201 : vector<2x128xbf16> to vector<2x128xf32>
    %203 = arith.addf %202, %4 : vector<2x128xf32>
    %cst_46 = arith.constant dense<0.000000e+00> : vector<2x128xf32>
    %204 = tpu.matmul %198, %3, %cst_46 {dimension_numbers = #tpu.dot_dimension_numbers<[1], [0], [0], [1], [0, 0, 1, 1], [], []>} : vector<2x32xf32>, vector<32x128xf32>, vector<2x128xf32> -> vector<2x128xf32>
    %205 = arith.addf %203, %204 : vector<2x128xf32>
    %206 = vector.extract_strided_slice %205 {offsets = [0, 0], sizes = [2, 32], strides = [1, 1]} : vector<2x128xf32> to vector<2x32xf32>
    %207 = arith.negf %206 : vector<2x32xf32>
    %208 = math.exp %207 : vector<2x32xf32>
    %cst_47 = arith.constant 1.000000e+00 : f32
    %209 = vector.broadcast %cst_47 : f32 to vector<2x32xf32>
    %210 = arith.addf %209, %208 : vector<2x32xf32>
    %211 = arith.divf %209, %210 : vector<2x32xf32>
    %212 = vector.extract_strided_slice %205 {offsets = [0, 32], sizes = [2, 32], strides = [1, 1]} : vector<2x128xf32> to vector<2x32xf32>
    %213 = arith.negf %212 : vector<2x32xf32>
    %214 = math.exp %213 : vector<2x32xf32>
    %cst_48 = arith.constant 1.000000e+00 : f32
    %215 = vector.broadcast %cst_48 : f32 to vector<2x32xf32>
    %216 = arith.addf %215, %214 : vector<2x32xf32>
    %217 = arith.divf %215, %216 : vector<2x32xf32>
    %218 = vector.extract_strided_slice %205 {offsets = [0, 64], sizes = [2, 32], strides = [1, 1]} : vector<2x128xf32> to vector<2x32xf32>
    %219 = math.tanh %218 : vector<2x32xf32>
    %220 = vector.extract_strided_slice %205 {offsets = [0, 96], sizes = [2, 32], strides = [1, 1]} : vector<2x128xf32> to vector<2x32xf32>
    %221 = arith.negf %220 : vector<2x32xf32>
    %222 = math.exp %221 : vector<2x32xf32>
    %cst_49 = arith.constant 1.000000e+00 : f32
    %223 = vector.broadcast %cst_49 : f32 to vector<2x32xf32>
    %224 = arith.addf %223, %222 : vector<2x32xf32>
    %225 = arith.divf %223, %224 : vector<2x32xf32>
    %226 = arith.mulf %217, %196 : vector<2x32xf32>
    %227 = arith.mulf %211, %219 : vector<2x32xf32>
    %228 = arith.addf %226, %227 : vector<2x32xf32>
    %229 = math.tanh %228 : vector<2x32xf32>
    %230 = arith.mulf %225, %229 : vector<2x32xf32>
    %c7_i32 = arith.constant 7 : i32
    %231 = arith.index_cast %c7_i32 : i32 to index
    %c0_50 = arith.constant 0 : index
    %c0_51 = arith.constant 0 : index
    %232 = vector.load %arg1[%231, %c0_50, %c0_51] : memref<8x2x128xbf16, #tpu.memory_space<vmem>>, vector<1x2x128xbf16>
    %233 = vector.shape_cast %232 : vector<1x2x128xbf16> to vector<2x128xbf16>
    %234 = arith.extf %233 : vector<2x128xbf16> to vector<2x128xf32>
    %235 = arith.addf %234, %4 : vector<2x128xf32>
    %cst_52 = arith.constant dense<0.000000e+00> : vector<2x128xf32>
    %236 = tpu.matmul %230, %3, %cst_52 {dimension_numbers = #tpu.dot_dimension_numbers<[1], [0], [0], [1], [0, 0, 1, 1], [], []>} : vector<2x32xf32>, vector<32x128xf32>, vector<2x128xf32> -> vector<2x128xf32>
    %237 = arith.addf %235, %236 : vector<2x128xf32>
    %238 = vector.extract_strided_slice %237 {offsets = [0, 0], sizes = [2, 32], strides = [1, 1]} : vector<2x128xf32> to vector<2x32xf32>
    %239 = arith.negf %238 : vector<2x32xf32>
    %240 = math.exp %239 : vector<2x32xf32>
    %cst_53 = arith.constant 1.000000e+00 : f32
    %241 = vector.broadcast %cst_53 : f32 to vector<2x32xf32>
    %242 = arith.addf %241, %240 : vector<2x32xf32>
    %243 = arith.divf %241, %242 : vector<2x32xf32>
    %244 = vector.extract_strided_slice %237 {offsets = [0, 32], sizes = [2, 32], strides = [1, 1]} : vector<2x128xf32> to vector<2x32xf32>
    %245 = arith.negf %244 : vector<2x32xf32>
    %246 = math.exp %245 : vector<2x32xf32>
    %cst_54 = arith.constant 1.000000e+00 : f32
    %247 = vector.broadcast %cst_54 : f32 to vector<2x32xf32>
    %248 = arith.addf %247, %246 : vector<2x32xf32>
    %249 = arith.divf %247, %248 : vector<2x32xf32>
    %250 = vector.extract_strided_slice %237 {offsets = [0, 64], sizes = [2, 32], strides = [1, 1]} : vector<2x128xf32> to vector<2x32xf32>
    %251 = math.tanh %250 : vector<2x32xf32>
    %252 = vector.extract_strided_slice %237 {offsets = [0, 96], sizes = [2, 32], strides = [1, 1]} : vector<2x128xf32> to vector<2x32xf32>
    %253 = arith.negf %252 : vector<2x32xf32>
    %254 = math.exp %253 : vector<2x32xf32>
    %cst_55 = arith.constant 1.000000e+00 : f32
    %255 = vector.broadcast %cst_55 : f32 to vector<2x32xf32>
    %256 = arith.addf %255, %254 : vector<2x32xf32>
    %257 = arith.divf %255, %256 : vector<2x32xf32>
    %258 = arith.mulf %249, %228 : vector<2x32xf32>
    %259 = arith.mulf %243, %251 : vector<2x32xf32>
    %260 = arith.addf %258, %259 : vector<2x32xf32>
    %261 = math.tanh %260 : vector<2x32xf32>
    %262 = arith.mulf %257, %261 : vector<2x32xf32>
    %c8_i32 = arith.constant 8 : i32
    %c0_56 = arith.constant 0 : index
    %c0_57 = arith.constant 0 : index
    %263 = vector.load %arg10[%c0_56, %c0_57] : memref<2x32xf32, #tpu.memory_space<vmem>>, vector<2x32xf32>
    tpu.vector_store %arg10[%c0_56, %c0_57], %262 {strides = array<i32>} : memref<2x32xf32, #tpu.memory_space<vmem>>, vector<2x32xf32>,
    %c0_58 = arith.constant 0 : index
    %c0_59 = arith.constant 0 : index
    %264 = vector.load %arg11[%c0_58, %c0_59] : memref<2x32xf32, #tpu.memory_space<vmem>>, vector<2x32xf32>
    tpu.vector_store %arg11[%c0_58, %c0_59], %260 {strides = array<i32>} : memref<2x32xf32, #tpu.memory_space<vmem>>, vector<2x32xf32>,
    %c0_i32_60 = arith.constant 0 : i32
    %265 = arith.cmpi eq, %arg0, %c0_i32_60 : i32
    %266 = arith.extui %265 : i1 to i32
    %c0_i32_61 = arith.constant 0 : i32
    %267 = arith.cmpi ne, %266, %c0_i32_61 : i32
    scf.if %267 {
      %c0_62 = arith.constant 0 : index
      %c0_63 = arith.constant 0 : index
      %268 = vector.load %arg4[%c0_62, %c0_63] : memref<32x16xf32, #tpu.memory_space<vmem>>, vector<32x16xf32>
      %cst_64 = arith.constant dense<0.000000e+00> : vector<2x16xf32>
      %269 = tpu.matmul %262, %268, %cst_64 {dimension_numbers = #tpu.dot_dimension_numbers<[1], [0], [0], [1], [0, 0, 1, 1], [], []>} : vector<2x32xf32>, vector<32x16xf32>, vector<2x16xf32> -> vector<2x16xf32>
      %c0_65 = arith.constant 0 : index
      %c0_66 = arith.constant 0 : index
      %270 = vector.load %arg5[%c0_65, %c0_66] : memref<1x16xf32, #tpu.memory_space<vmem>>, vector<1x16xf32>
      %271 = vector.broadcast %270 : vector<1x16xf32> to vector<2x16xf32>
      %272 = arith.addf %269, %271 : vector<2x16xf32>
      %273 = vector.extract_strided_slice %272 {offsets = [0, 0], sizes = [2, 8], strides = [1, 1]} : vector<2x16xf32> to vector<2x8xf32>
      %274 = vector.extract_strided_slice %272 {offsets = [0, 8], sizes = [2, 8], strides = [1, 1]} : vector<2x16xf32> to vector<2x8xf32>
      %c0_67 = arith.constant 0 : index
      %c0_68 = arith.constant 0 : index
      %275 = vector.load %arg7[%c0_67, %c0_68] : memref<2x8xf32, #tpu.memory_space<vmem>>, vector<2x8xf32>
      tpu.vector_store %arg7[%c0_67, %c0_68], %273 {strides = array<i32>} : memref<2x8xf32, #tpu.memory_space<vmem>>, vector<2x8xf32>,
      %c0_69 = arith.constant 0 : index
      %c0_70 = arith.constant 0 : index
      %276 = vector.load %arg8[%c0_69, %c0_70] : memref<2x8xf32, #tpu.memory_space<vmem>>, vector<2x8xf32>
      tpu.vector_store %arg8[%c0_69, %c0_70], %274 {strides = array<i32>} : memref<2x8xf32, #tpu.memory_space<vmem>>, vector<2x8xf32>,
      %c0_71 = arith.constant 0 : index
      %c0_72 = arith.constant 0 : index
      %277 = vector.load %arg6[%c0_71, %c0_72] : memref<2x8xf32, #tpu.memory_space<vmem>>, vector<2x8xf32>
      %cst_73 = arith.constant 5.000000e-01 : f32
      %278 = vector.broadcast %cst_73 : f32 to vector<2x8xf32>
      %279 = arith.mulf %278, %274 : vector<2x8xf32>
      %280 = math.exp %279 : vector<2x8xf32>
      %281 = arith.mulf %277, %280 : vector<2x8xf32>
      %282 = arith.addf %273, %281 : vector<2x8xf32>
      %c0_74 = arith.constant 0 : index
      %c0_75 = arith.constant 0 : index
      %283 = vector.load %arg9[%c0_74, %c0_75] : memref<2x8xf32, #tpu.memory_space<vmem>>, vector<2x8xf32>
      tpu.vector_store %arg9[%c0_74, %c0_75], %282 {strides = array<i32>} : memref<2x8xf32, #tpu.memory_space<vmem>>, vector<2x8xf32>,
    } else {
    }
    return
  }
  func.func @transform_0(%arg0: i32) -> (i32, i32, i32) {
    %c0_i32 = arith.constant 0 : i32
    %c0_i32_0 = arith.constant 0 : i32
    %c0_i32_1 = arith.constant 0 : i32
    return %arg0, %c0_i32, %c0_i32_0 : i32, i32, i32
  }
  func.func @transform_1(%arg0: i32) -> (i32, i32) {
    %c0_i32 = arith.constant 0 : i32
    %c0_i32_0 = arith.constant 0 : i32
    %c0_i32_1 = arith.constant 0 : i32
    return %c0_i32, %c0_i32_0 : i32, i32
  }
  func.func @transform_2(%arg0: i32) -> (i32, i32) {
    %c0_i32 = arith.constant 0 : i32
    %c0_i32_0 = arith.constant 0 : i32
    %c0_i32_1 = arith.constant 0 : i32
    return %c0_i32, %c0_i32_0 : i32, i32
  }
  func.func @transform_3(%arg0: i32) -> (i32, i32) {
    %c0_i32 = arith.constant 0 : i32
    %c0_i32_0 = arith.constant 0 : i32
    %c0_i32_1 = arith.constant 0 : i32
    return %c0_i32, %c0_i32_0 : i32, i32
  }
  func.func @transform_4(%arg0: i32) -> (i32, i32) {
    %c0_i32 = arith.constant 0 : i32
    %c0_i32_0 = arith.constant 0 : i32
    %c0_i32_1 = arith.constant 0 : i32
    return %c0_i32, %c0_i32_0 : i32, i32
  }
  func.func @transform_5(%arg0: i32) -> (i32, i32) {
    %c0_i32 = arith.constant 0 : i32
    %c0_i32_0 = arith.constant 0 : i32
    %c0_i32_1 = arith.constant 0 : i32
    return %c0_i32, %c0_i32_0 : i32, i32
  }
  func.func @transform_6(%arg0: i32) -> (i32, i32) {
    %c0_i32 = arith.constant 0 : i32
    %c0_i32_0 = arith.constant 0 : i32
    %c0_i32_1 = arith.constant 0 : i32
    return %c0_i32, %c0_i32_0 : i32, i32
  }
  func.func @transform_7(%arg0: i32) -> (i32, i32) {
    %c0_i32 = arith.constant 0 : i32
    %c0_i32_0 = arith.constant 0 : i32
    %c0_i32_1 = arith.constant 0 : i32
    return %c0_i32, %c0_i32_0 : i32, i32
  }
  func.func @transform_8(%arg0: i32) -> (i32, i32) {
    %c0_i32 = arith.constant 0 : i32
    %c0_i32_0 = arith.constant 0 : i32
    %c0_i32_1 = arith.constant 0 : i32
    return %c0_i32, %c0_i32_0 : i32, i32
  }
}

module attributes {stable_mosaic.version = 11 : i64} {
  func.func @kernel(%arg0: i32, %arg1: memref<2x12xf32, #tpu.memory_space<vmem>>, %arg2: memref<12x32xf32, #tpu.memory_space<vmem>>, %arg3: memref<1x32xf32, #tpu.memory_space<vmem>>, %arg4: memref<8x2x128xbf16, #tpu.memory_space<vmem>>, %arg5: memref<32x128xf32, #tpu.memory_space<vmem>>, %arg6: memref<8x2x32xbf16, #tpu.memory_space<vmem>>, %arg7: memref<2x32xf32, #tpu.memory_space<vmem>>, %arg8: memref<2x32xf32, #tpu.memory_space<vmem>>) attributes {dimension_semantics = [#tpu.dimension_semantics<arbitrary>], iteration_bounds = array<i64: 1>, scalar_prefetch = 0 : i64, scratch_operands = 2 : i64, tpu.core_type = #tpu.core_type<tc>, window_params = [{pipeline_mode = #tpu.pipeline_mode<synchronous>, transform_indices = @transform_0, window_bounds = array<i64: 2, 12>}, {pipeline_mode = #tpu.pipeline_mode<synchronous>, transform_indices = @transform_1, window_bounds = array<i64: 12, 32>}, {pipeline_mode = #tpu.pipeline_mode<synchronous>, transform_indices = @transform_2, window_bounds = array<i64: 1, 32>}, {transform_indices = @transform_3, window_bounds = array<i64: 8, 2, 128>}, {pipeline_mode = #tpu.pipeline_mode<synchronous>, transform_indices = @transform_4, window_bounds = array<i64: 32, 128>}, {transform_indices = @transform_5, window_bounds = array<i64: 8, 2, 32>}]} {
    %c0_i32 = arith.constant 0 : i32
    %0 = arith.cmpi eq, %arg0, %c0_i32 : i32
    %1 = arith.extui %0 : i1 to i32
    %c0_i32_0 = arith.constant 0 : i32
    %2 = arith.cmpi ne, %1, %c0_i32_0 : i32
    scf.if %2 {
      %c0_74 = arith.constant 0 : index
      %c0_75 = arith.constant 0 : index
      %296 = vector.load %arg1[%c0_74, %c0_75] : memref<2x12xf32, #tpu.memory_space<vmem>>, vector<2x12xf32>
      %c0_76 = arith.constant 0 : index
      %c0_77 = arith.constant 0 : index
      %297 = vector.load %arg2[%c0_76, %c0_77] : memref<12x32xf32, #tpu.memory_space<vmem>>, vector<12x32xf32>
      %cst_78 = arith.constant dense<0.000000e+00> : vector<2x32xf32>
      %298 = tpu.matmul %296, %297, %cst_78 {dimension_numbers = #tpu.dot_dimension_numbers<[1], [0], [0], [1], [0, 0, 1, 1], [], []>} : vector<2x12xf32>, vector<12x32xf32>, vector<2x32xf32> -> vector<2x32xf32>
      %c0_79 = arith.constant 0 : index
      %c0_80 = arith.constant 0 : index
      %299 = vector.load %arg3[%c0_79, %c0_80] : memref<1x32xf32, #tpu.memory_space<vmem>>, vector<1x32xf32>
      %300 = vector.broadcast %299 : vector<1x32xf32> to vector<2x32xf32>
      %301 = arith.addf %298, %300 : vector<2x32xf32>
      %302 = math.tanh %301 : vector<2x32xf32>
      %c0_81 = arith.constant 0 : index
      %c0_82 = arith.constant 0 : index
      %303 = vector.load %arg7[%c0_81, %c0_82] : memref<2x32xf32, #tpu.memory_space<vmem>>, vector<2x32xf32>
      tpu.vector_store %arg7[%c0_81, %c0_82], %302 {strides = array<i32>} : memref<2x32xf32, #tpu.memory_space<vmem>>, vector<2x32xf32>,
      %cst_83 = arith.constant 0.000000e+00 : f32
      %304 = vector.broadcast %cst_83 : f32 to vector<2x32xf32>
      %c0_84 = arith.constant 0 : index
      %c0_85 = arith.constant 0 : index
      %305 = vector.load %arg8[%c0_84, %c0_85] : memref<2x32xf32, #tpu.memory_space<vmem>>, vector<2x32xf32>
      tpu.vector_store %arg8[%c0_84, %c0_85], %304 {strides = array<i32>} : memref<2x32xf32, #tpu.memory_space<vmem>>, vector<2x32xf32>,
    } else {
    }
    %c0 = arith.constant 0 : index
    %c0_1 = arith.constant 0 : index
    %3 = vector.load %arg5[%c0, %c0_1] : memref<32x128xf32, #tpu.memory_space<vmem>>, vector<32x128xf32>
    %c0_2 = arith.constant 0 : index
    %c0_3 = arith.constant 0 : index
    %4 = vector.load %arg7[%c0_2, %c0_3] : memref<2x32xf32, #tpu.memory_space<vmem>>, vector<2x32xf32>
    %c0_4 = arith.constant 0 : index
    %c0_5 = arith.constant 0 : index
    %5 = vector.load %arg8[%c0_4, %c0_5] : memref<2x32xf32, #tpu.memory_space<vmem>>, vector<2x32xf32>
    %c0_i32_6 = arith.constant 0 : i32
    %6 = arith.index_cast %c0_i32_6 : i32 to index
    %c0_7 = arith.constant 0 : index
    %c0_8 = arith.constant 0 : index
    %7 = vector.load %arg4[%6, %c0_7, %c0_8] : memref<8x2x128xbf16, #tpu.memory_space<vmem>>, vector<1x2x128xbf16>
    %8 = vector.shape_cast %7 : vector<1x2x128xbf16> to vector<2x128xbf16>
    %9 = arith.extf %8 : vector<2x128xbf16> to vector<2x128xf32>
    %cst = arith.constant dense<0.000000e+00> : vector<2x128xf32>
    %10 = tpu.matmul %4, %3, %cst {dimension_numbers = #tpu.dot_dimension_numbers<[1], [0], [0], [1], [0, 0, 1, 1], [], []>} : vector<2x32xf32>, vector<32x128xf32>, vector<2x128xf32> -> vector<2x128xf32>
    %11 = arith.addf %9, %10 : vector<2x128xf32>
    %12 = vector.extract_strided_slice %11 {offsets = [0, 0], sizes = [2, 32], strides = [1, 1]} : vector<2x128xf32> to vector<2x32xf32>
    %13 = arith.negf %12 : vector<2x32xf32>
    %14 = math.exp %13 : vector<2x32xf32>
    %cst_9 = arith.constant 1.000000e+00 : f32
    %15 = vector.broadcast %cst_9 : f32 to vector<2x32xf32>
    %16 = arith.addf %15, %14 : vector<2x32xf32>
    %17 = arith.divf %15, %16 : vector<2x32xf32>
    %18 = vector.extract_strided_slice %11 {offsets = [0, 32], sizes = [2, 32], strides = [1, 1]} : vector<2x128xf32> to vector<2x32xf32>
    %19 = arith.negf %18 : vector<2x32xf32>
    %20 = math.exp %19 : vector<2x32xf32>
    %cst_10 = arith.constant 1.000000e+00 : f32
    %21 = vector.broadcast %cst_10 : f32 to vector<2x32xf32>
    %22 = arith.addf %21, %20 : vector<2x32xf32>
    %23 = arith.divf %21, %22 : vector<2x32xf32>
    %24 = vector.extract_strided_slice %11 {offsets = [0, 64], sizes = [2, 32], strides = [1, 1]} : vector<2x128xf32> to vector<2x32xf32>
    %25 = math.tanh %24 : vector<2x32xf32>
    %26 = vector.extract_strided_slice %11 {offsets = [0, 96], sizes = [2, 32], strides = [1, 1]} : vector<2x128xf32> to vector<2x32xf32>
    %27 = arith.negf %26 : vector<2x32xf32>
    %28 = math.exp %27 : vector<2x32xf32>
    %cst_11 = arith.constant 1.000000e+00 : f32
    %29 = vector.broadcast %cst_11 : f32 to vector<2x32xf32>
    %30 = arith.addf %29, %28 : vector<2x32xf32>
    %31 = arith.divf %29, %30 : vector<2x32xf32>
    %32 = arith.mulf %23, %5 : vector<2x32xf32>
    %33 = arith.mulf %17, %25 : vector<2x32xf32>
    %34 = arith.addf %32, %33 : vector<2x32xf32>
    %35 = math.tanh %34 : vector<2x32xf32>
    %36 = arith.mulf %31, %35 : vector<2x32xf32>
    %37 = arith.truncf %36 : vector<2x32xf32> to vector<2x32xbf16>
    %38 = arith.index_cast %c0_i32_6 : i32 to index
    %c0_12 = arith.constant 0 : index
    %c0_13 = arith.constant 0 : index
    %39 = vector.load %arg6[%38, %c0_12, %c0_13] : memref<8x2x32xbf16, #tpu.memory_space<vmem>>, vector<1x2x32xbf16>
    %40 = vector.shape_cast %39 : vector<1x2x32xbf16> to vector<2x32xbf16>
    %41 = vector.shape_cast %37 : vector<2x32xbf16> to vector<1x2x32xbf16>
    tpu.vector_store %arg6[%38, %c0_12, %c0_13], %41 {strides = array<i32>} : memref<8x2x32xbf16, #tpu.memory_space<vmem>>, vector<1x2x32xbf16>,
    %c1_i32 = arith.constant 1 : i32
    %42 = arith.index_cast %c1_i32 : i32 to index
    %c0_14 = arith.constant 0 : index
    %c0_15 = arith.constant 0 : index
    %43 = vector.load %arg4[%42, %c0_14, %c0_15] : memref<8x2x128xbf16, #tpu.memory_space<vmem>>, vector<1x2x128xbf16>
    %44 = vector.shape_cast %43 : vector<1x2x128xbf16> to vector<2x128xbf16>
    %45 = arith.extf %44 : vector<2x128xbf16> to vector<2x128xf32>
    %cst_16 = arith.constant dense<0.000000e+00> : vector<2x128xf32>
    %46 = tpu.matmul %36, %3, %cst_16 {dimension_numbers = #tpu.dot_dimension_numbers<[1], [0], [0], [1], [0, 0, 1, 1], [], []>} : vector<2x32xf32>, vector<32x128xf32>, vector<2x128xf32> -> vector<2x128xf32>
    %47 = arith.addf %45, %46 : vector<2x128xf32>
    %48 = vector.extract_strided_slice %47 {offsets = [0, 0], sizes = [2, 32], strides = [1, 1]} : vector<2x128xf32> to vector<2x32xf32>
    %49 = arith.negf %48 : vector<2x32xf32>
    %50 = math.exp %49 : vector<2x32xf32>
    %cst_17 = arith.constant 1.000000e+00 : f32
    %51 = vector.broadcast %cst_17 : f32 to vector<2x32xf32>
    %52 = arith.addf %51, %50 : vector<2x32xf32>
    %53 = arith.divf %51, %52 : vector<2x32xf32>
    %54 = vector.extract_strided_slice %47 {offsets = [0, 32], sizes = [2, 32], strides = [1, 1]} : vector<2x128xf32> to vector<2x32xf32>
    %55 = arith.negf %54 : vector<2x32xf32>
    %56 = math.exp %55 : vector<2x32xf32>
    %cst_18 = arith.constant 1.000000e+00 : f32
    %57 = vector.broadcast %cst_18 : f32 to vector<2x32xf32>
    %58 = arith.addf %57, %56 : vector<2x32xf32>
    %59 = arith.divf %57, %58 : vector<2x32xf32>
    %60 = vector.extract_strided_slice %47 {offsets = [0, 64], sizes = [2, 32], strides = [1, 1]} : vector<2x128xf32> to vector<2x32xf32>
    %61 = math.tanh %60 : vector<2x32xf32>
    %62 = vector.extract_strided_slice %47 {offsets = [0, 96], sizes = [2, 32], strides = [1, 1]} : vector<2x128xf32> to vector<2x32xf32>
    %63 = arith.negf %62 : vector<2x32xf32>
    %64 = math.exp %63 : vector<2x32xf32>
    %cst_19 = arith.constant 1.000000e+00 : f32
    %65 = vector.broadcast %cst_19 : f32 to vector<2x32xf32>
    %66 = arith.addf %65, %64 : vector<2x32xf32>
    %67 = arith.divf %65, %66 : vector<2x32xf32>
    %68 = arith.mulf %59, %34 : vector<2x32xf32>
    %69 = arith.mulf %53, %61 : vector<2x32xf32>
    %70 = arith.addf %68, %69 : vector<2x32xf32>
    %71 = math.tanh %70 : vector<2x32xf32>
    %72 = arith.mulf %67, %71 : vector<2x32xf32>
    %73 = arith.truncf %72 : vector<2x32xf32> to vector<2x32xbf16>
    %74 = arith.index_cast %c1_i32 : i32 to index
    %c0_20 = arith.constant 0 : index
    %c0_21 = arith.constant 0 : index
    %75 = vector.load %arg6[%74, %c0_20, %c0_21] : memref<8x2x32xbf16, #tpu.memory_space<vmem>>, vector<1x2x32xbf16>
    %76 = vector.shape_cast %75 : vector<1x2x32xbf16> to vector<2x32xbf16>
    %77 = vector.shape_cast %73 : vector<2x32xbf16> to vector<1x2x32xbf16>
    tpu.vector_store %arg6[%74, %c0_20, %c0_21], %77 {strides = array<i32>} : memref<8x2x32xbf16, #tpu.memory_space<vmem>>, vector<1x2x32xbf16>,
    %c2_i32 = arith.constant 2 : i32
    %78 = arith.index_cast %c2_i32 : i32 to index
    %c0_22 = arith.constant 0 : index
    %c0_23 = arith.constant 0 : index
    %79 = vector.load %arg4[%78, %c0_22, %c0_23] : memref<8x2x128xbf16, #tpu.memory_space<vmem>>, vector<1x2x128xbf16>
    %80 = vector.shape_cast %79 : vector<1x2x128xbf16> to vector<2x128xbf16>
    %81 = arith.extf %80 : vector<2x128xbf16> to vector<2x128xf32>
    %cst_24 = arith.constant dense<0.000000e+00> : vector<2x128xf32>
    %82 = tpu.matmul %72, %3, %cst_24 {dimension_numbers = #tpu.dot_dimension_numbers<[1], [0], [0], [1], [0, 0, 1, 1], [], []>} : vector<2x32xf32>, vector<32x128xf32>, vector<2x128xf32> -> vector<2x128xf32>
    %83 = arith.addf %81, %82 : vector<2x128xf32>
    %84 = vector.extract_strided_slice %83 {offsets = [0, 0], sizes = [2, 32], strides = [1, 1]} : vector<2x128xf32> to vector<2x32xf32>
    %85 = arith.negf %84 : vector<2x32xf32>
    %86 = math.exp %85 : vector<2x32xf32>
    %cst_25 = arith.constant 1.000000e+00 : f32
    %87 = vector.broadcast %cst_25 : f32 to vector<2x32xf32>
    %88 = arith.addf %87, %86 : vector<2x32xf32>
    %89 = arith.divf %87, %88 : vector<2x32xf32>
    %90 = vector.extract_strided_slice %83 {offsets = [0, 32], sizes = [2, 32], strides = [1, 1]} : vector<2x128xf32> to vector<2x32xf32>
    %91 = arith.negf %90 : vector<2x32xf32>
    %92 = math.exp %91 : vector<2x32xf32>
    %cst_26 = arith.constant 1.000000e+00 : f32
    %93 = vector.broadcast %cst_26 : f32 to vector<2x32xf32>
    %94 = arith.addf %93, %92 : vector<2x32xf32>
    %95 = arith.divf %93, %94 : vector<2x32xf32>
    %96 = vector.extract_strided_slice %83 {offsets = [0, 64], sizes = [2, 32], strides = [1, 1]} : vector<2x128xf32> to vector<2x32xf32>
    %97 = math.tanh %96 : vector<2x32xf32>
    %98 = vector.extract_strided_slice %83 {offsets = [0, 96], sizes = [2, 32], strides = [1, 1]} : vector<2x128xf32> to vector<2x32xf32>
    %99 = arith.negf %98 : vector<2x32xf32>
    %100 = math.exp %99 : vector<2x32xf32>
    %cst_27 = arith.constant 1.000000e+00 : f32
    %101 = vector.broadcast %cst_27 : f32 to vector<2x32xf32>
    %102 = arith.addf %101, %100 : vector<2x32xf32>
    %103 = arith.divf %101, %102 : vector<2x32xf32>
    %104 = arith.mulf %95, %70 : vector<2x32xf32>
    %105 = arith.mulf %89, %97 : vector<2x32xf32>
    %106 = arith.addf %104, %105 : vector<2x32xf32>
    %107 = math.tanh %106 : vector<2x32xf32>
    %108 = arith.mulf %103, %107 : vector<2x32xf32>
    %109 = arith.truncf %108 : vector<2x32xf32> to vector<2x32xbf16>
    %110 = arith.index_cast %c2_i32 : i32 to index
    %c0_28 = arith.constant 0 : index
    %c0_29 = arith.constant 0 : index
    %111 = vector.load %arg6[%110, %c0_28, %c0_29] : memref<8x2x32xbf16, #tpu.memory_space<vmem>>, vector<1x2x32xbf16>
    %112 = vector.shape_cast %111 : vector<1x2x32xbf16> to vector<2x32xbf16>
    %113 = vector.shape_cast %109 : vector<2x32xbf16> to vector<1x2x32xbf16>
    tpu.vector_store %arg6[%110, %c0_28, %c0_29], %113 {strides = array<i32>} : memref<8x2x32xbf16, #tpu.memory_space<vmem>>, vector<1x2x32xbf16>,
    %c3_i32 = arith.constant 3 : i32
    %114 = arith.index_cast %c3_i32 : i32 to index
    %c0_30 = arith.constant 0 : index
    %c0_31 = arith.constant 0 : index
    %115 = vector.load %arg4[%114, %c0_30, %c0_31] : memref<8x2x128xbf16, #tpu.memory_space<vmem>>, vector<1x2x128xbf16>
    %116 = vector.shape_cast %115 : vector<1x2x128xbf16> to vector<2x128xbf16>
    %117 = arith.extf %116 : vector<2x128xbf16> to vector<2x128xf32>
    %cst_32 = arith.constant dense<0.000000e+00> : vector<2x128xf32>
    %118 = tpu.matmul %108, %3, %cst_32 {dimension_numbers = #tpu.dot_dimension_numbers<[1], [0], [0], [1], [0, 0, 1, 1], [], []>} : vector<2x32xf32>, vector<32x128xf32>, vector<2x128xf32> -> vector<2x128xf32>
    %119 = arith.addf %117, %118 : vector<2x128xf32>
    %120 = vector.extract_strided_slice %119 {offsets = [0, 0], sizes = [2, 32], strides = [1, 1]} : vector<2x128xf32> to vector<2x32xf32>
    %121 = arith.negf %120 : vector<2x32xf32>
    %122 = math.exp %121 : vector<2x32xf32>
    %cst_33 = arith.constant 1.000000e+00 : f32
    %123 = vector.broadcast %cst_33 : f32 to vector<2x32xf32>
    %124 = arith.addf %123, %122 : vector<2x32xf32>
    %125 = arith.divf %123, %124 : vector<2x32xf32>
    %126 = vector.extract_strided_slice %119 {offsets = [0, 32], sizes = [2, 32], strides = [1, 1]} : vector<2x128xf32> to vector<2x32xf32>
    %127 = arith.negf %126 : vector<2x32xf32>
    %128 = math.exp %127 : vector<2x32xf32>
    %cst_34 = arith.constant 1.000000e+00 : f32
    %129 = vector.broadcast %cst_34 : f32 to vector<2x32xf32>
    %130 = arith.addf %129, %128 : vector<2x32xf32>
    %131 = arith.divf %129, %130 : vector<2x32xf32>
    %132 = vector.extract_strided_slice %119 {offsets = [0, 64], sizes = [2, 32], strides = [1, 1]} : vector<2x128xf32> to vector<2x32xf32>
    %133 = math.tanh %132 : vector<2x32xf32>
    %134 = vector.extract_strided_slice %119 {offsets = [0, 96], sizes = [2, 32], strides = [1, 1]} : vector<2x128xf32> to vector<2x32xf32>
    %135 = arith.negf %134 : vector<2x32xf32>
    %136 = math.exp %135 : vector<2x32xf32>
    %cst_35 = arith.constant 1.000000e+00 : f32
    %137 = vector.broadcast %cst_35 : f32 to vector<2x32xf32>
    %138 = arith.addf %137, %136 : vector<2x32xf32>
    %139 = arith.divf %137, %138 : vector<2x32xf32>
    %140 = arith.mulf %131, %106 : vector<2x32xf32>
    %141 = arith.mulf %125, %133 : vector<2x32xf32>
    %142 = arith.addf %140, %141 : vector<2x32xf32>
    %143 = math.tanh %142 : vector<2x32xf32>
    %144 = arith.mulf %139, %143 : vector<2x32xf32>
    %145 = arith.truncf %144 : vector<2x32xf32> to vector<2x32xbf16>
    %146 = arith.index_cast %c3_i32 : i32 to index
    %c0_36 = arith.constant 0 : index
    %c0_37 = arith.constant 0 : index
    %147 = vector.load %arg6[%146, %c0_36, %c0_37] : memref<8x2x32xbf16, #tpu.memory_space<vmem>>, vector<1x2x32xbf16>
    %148 = vector.shape_cast %147 : vector<1x2x32xbf16> to vector<2x32xbf16>
    %149 = vector.shape_cast %145 : vector<2x32xbf16> to vector<1x2x32xbf16>
    tpu.vector_store %arg6[%146, %c0_36, %c0_37], %149 {strides = array<i32>} : memref<8x2x32xbf16, #tpu.memory_space<vmem>>, vector<1x2x32xbf16>,
    %c4_i32 = arith.constant 4 : i32
    %150 = arith.index_cast %c4_i32 : i32 to index
    %c0_38 = arith.constant 0 : index
    %c0_39 = arith.constant 0 : index
    %151 = vector.load %arg4[%150, %c0_38, %c0_39] : memref<8x2x128xbf16, #tpu.memory_space<vmem>>, vector<1x2x128xbf16>
    %152 = vector.shape_cast %151 : vector<1x2x128xbf16> to vector<2x128xbf16>
    %153 = arith.extf %152 : vector<2x128xbf16> to vector<2x128xf32>
    %cst_40 = arith.constant dense<0.000000e+00> : vector<2x128xf32>
    %154 = tpu.matmul %144, %3, %cst_40 {dimension_numbers = #tpu.dot_dimension_numbers<[1], [0], [0], [1], [0, 0, 1, 1], [], []>} : vector<2x32xf32>, vector<32x128xf32>, vector<2x128xf32> -> vector<2x128xf32>
    %155 = arith.addf %153, %154 : vector<2x128xf32>
    %156 = vector.extract_strided_slice %155 {offsets = [0, 0], sizes = [2, 32], strides = [1, 1]} : vector<2x128xf32> to vector<2x32xf32>
    %157 = arith.negf %156 : vector<2x32xf32>
    %158 = math.exp %157 : vector<2x32xf32>
    %cst_41 = arith.constant 1.000000e+00 : f32
    %159 = vector.broadcast %cst_41 : f32 to vector<2x32xf32>
    %160 = arith.addf %159, %158 : vector<2x32xf32>
    %161 = arith.divf %159, %160 : vector<2x32xf32>
    %162 = vector.extract_strided_slice %155 {offsets = [0, 32], sizes = [2, 32], strides = [1, 1]} : vector<2x128xf32> to vector<2x32xf32>
    %163 = arith.negf %162 : vector<2x32xf32>
    %164 = math.exp %163 : vector<2x32xf32>
    %cst_42 = arith.constant 1.000000e+00 : f32
    %165 = vector.broadcast %cst_42 : f32 to vector<2x32xf32>
    %166 = arith.addf %165, %164 : vector<2x32xf32>
    %167 = arith.divf %165, %166 : vector<2x32xf32>
    %168 = vector.extract_strided_slice %155 {offsets = [0, 64], sizes = [2, 32], strides = [1, 1]} : vector<2x128xf32> to vector<2x32xf32>
    %169 = math.tanh %168 : vector<2x32xf32>
    %170 = vector.extract_strided_slice %155 {offsets = [0, 96], sizes = [2, 32], strides = [1, 1]} : vector<2x128xf32> to vector<2x32xf32>
    %171 = arith.negf %170 : vector<2x32xf32>
    %172 = math.exp %171 : vector<2x32xf32>
    %cst_43 = arith.constant 1.000000e+00 : f32
    %173 = vector.broadcast %cst_43 : f32 to vector<2x32xf32>
    %174 = arith.addf %173, %172 : vector<2x32xf32>
    %175 = arith.divf %173, %174 : vector<2x32xf32>
    %176 = arith.mulf %167, %142 : vector<2x32xf32>
    %177 = arith.mulf %161, %169 : vector<2x32xf32>
    %178 = arith.addf %176, %177 : vector<2x32xf32>
    %179 = math.tanh %178 : vector<2x32xf32>
    %180 = arith.mulf %175, %179 : vector<2x32xf32>
    %181 = arith.truncf %180 : vector<2x32xf32> to vector<2x32xbf16>
    %182 = arith.index_cast %c4_i32 : i32 to index
    %c0_44 = arith.constant 0 : index
    %c0_45 = arith.constant 0 : index
    %183 = vector.load %arg6[%182, %c0_44, %c0_45] : memref<8x2x32xbf16, #tpu.memory_space<vmem>>, vector<1x2x32xbf16>
    %184 = vector.shape_cast %183 : vector<1x2x32xbf16> to vector<2x32xbf16>
    %185 = vector.shape_cast %181 : vector<2x32xbf16> to vector<1x2x32xbf16>
    tpu.vector_store %arg6[%182, %c0_44, %c0_45], %185 {strides = array<i32>} : memref<8x2x32xbf16, #tpu.memory_space<vmem>>, vector<1x2x32xbf16>,
    %c5_i32 = arith.constant 5 : i32
    %186 = arith.index_cast %c5_i32 : i32 to index
    %c0_46 = arith.constant 0 : index
    %c0_47 = arith.constant 0 : index
    %187 = vector.load %arg4[%186, %c0_46, %c0_47] : memref<8x2x128xbf16, #tpu.memory_space<vmem>>, vector<1x2x128xbf16>
    %188 = vector.shape_cast %187 : vector<1x2x128xbf16> to vector<2x128xbf16>
    %189 = arith.extf %188 : vector<2x128xbf16> to vector<2x128xf32>
    %cst_48 = arith.constant dense<0.000000e+00> : vector<2x128xf32>
    %190 = tpu.matmul %180, %3, %cst_48 {dimension_numbers = #tpu.dot_dimension_numbers<[1], [0], [0], [1], [0, 0, 1, 1], [], []>} : vector<2x32xf32>, vector<32x128xf32>, vector<2x128xf32> -> vector<2x128xf32>
    %191 = arith.addf %189, %190 : vector<2x128xf32>
    %192 = vector.extract_strided_slice %191 {offsets = [0, 0], sizes = [2, 32], strides = [1, 1]} : vector<2x128xf32> to vector<2x32xf32>
    %193 = arith.negf %192 : vector<2x32xf32>
    %194 = math.exp %193 : vector<2x32xf32>
    %cst_49 = arith.constant 1.000000e+00 : f32
    %195 = vector.broadcast %cst_49 : f32 to vector<2x32xf32>
    %196 = arith.addf %195, %194 : vector<2x32xf32>
    %197 = arith.divf %195, %196 : vector<2x32xf32>
    %198 = vector.extract_strided_slice %191 {offsets = [0, 32], sizes = [2, 32], strides = [1, 1]} : vector<2x128xf32> to vector<2x32xf32>
    %199 = arith.negf %198 : vector<2x32xf32>
    %200 = math.exp %199 : vector<2x32xf32>
    %cst_50 = arith.constant 1.000000e+00 : f32
    %201 = vector.broadcast %cst_50 : f32 to vector<2x32xf32>
    %202 = arith.addf %201, %200 : vector<2x32xf32>
    %203 = arith.divf %201, %202 : vector<2x32xf32>
    %204 = vector.extract_strided_slice %191 {offsets = [0, 64], sizes = [2, 32], strides = [1, 1]} : vector<2x128xf32> to vector<2x32xf32>
    %205 = math.tanh %204 : vector<2x32xf32>
    %206 = vector.extract_strided_slice %191 {offsets = [0, 96], sizes = [2, 32], strides = [1, 1]} : vector<2x128xf32> to vector<2x32xf32>
    %207 = arith.negf %206 : vector<2x32xf32>
    %208 = math.exp %207 : vector<2x32xf32>
    %cst_51 = arith.constant 1.000000e+00 : f32
    %209 = vector.broadcast %cst_51 : f32 to vector<2x32xf32>
    %210 = arith.addf %209, %208 : vector<2x32xf32>
    %211 = arith.divf %209, %210 : vector<2x32xf32>
    %212 = arith.mulf %203, %178 : vector<2x32xf32>
    %213 = arith.mulf %197, %205 : vector<2x32xf32>
    %214 = arith.addf %212, %213 : vector<2x32xf32>
    %215 = math.tanh %214 : vector<2x32xf32>
    %216 = arith.mulf %211, %215 : vector<2x32xf32>
    %217 = arith.truncf %216 : vector<2x32xf32> to vector<2x32xbf16>
    %218 = arith.index_cast %c5_i32 : i32 to index
    %c0_52 = arith.constant 0 : index
    %c0_53 = arith.constant 0 : index
    %219 = vector.load %arg6[%218, %c0_52, %c0_53] : memref<8x2x32xbf16, #tpu.memory_space<vmem>>, vector<1x2x32xbf16>
    %220 = vector.shape_cast %219 : vector<1x2x32xbf16> to vector<2x32xbf16>
    %221 = vector.shape_cast %217 : vector<2x32xbf16> to vector<1x2x32xbf16>
    tpu.vector_store %arg6[%218, %c0_52, %c0_53], %221 {strides = array<i32>} : memref<8x2x32xbf16, #tpu.memory_space<vmem>>, vector<1x2x32xbf16>,
    %c6_i32 = arith.constant 6 : i32
    %222 = arith.index_cast %c6_i32 : i32 to index
    %c0_54 = arith.constant 0 : index
    %c0_55 = arith.constant 0 : index
    %223 = vector.load %arg4[%222, %c0_54, %c0_55] : memref<8x2x128xbf16, #tpu.memory_space<vmem>>, vector<1x2x128xbf16>
    %224 = vector.shape_cast %223 : vector<1x2x128xbf16> to vector<2x128xbf16>
    %225 = arith.extf %224 : vector<2x128xbf16> to vector<2x128xf32>
    %cst_56 = arith.constant dense<0.000000e+00> : vector<2x128xf32>
    %226 = tpu.matmul %216, %3, %cst_56 {dimension_numbers = #tpu.dot_dimension_numbers<[1], [0], [0], [1], [0, 0, 1, 1], [], []>} : vector<2x32xf32>, vector<32x128xf32>, vector<2x128xf32> -> vector<2x128xf32>
    %227 = arith.addf %225, %226 : vector<2x128xf32>
    %228 = vector.extract_strided_slice %227 {offsets = [0, 0], sizes = [2, 32], strides = [1, 1]} : vector<2x128xf32> to vector<2x32xf32>
    %229 = arith.negf %228 : vector<2x32xf32>
    %230 = math.exp %229 : vector<2x32xf32>
    %cst_57 = arith.constant 1.000000e+00 : f32
    %231 = vector.broadcast %cst_57 : f32 to vector<2x32xf32>
    %232 = arith.addf %231, %230 : vector<2x32xf32>
    %233 = arith.divf %231, %232 : vector<2x32xf32>
    %234 = vector.extract_strided_slice %227 {offsets = [0, 32], sizes = [2, 32], strides = [1, 1]} : vector<2x128xf32> to vector<2x32xf32>
    %235 = arith.negf %234 : vector<2x32xf32>
    %236 = math.exp %235 : vector<2x32xf32>
    %cst_58 = arith.constant 1.000000e+00 : f32
    %237 = vector.broadcast %cst_58 : f32 to vector<2x32xf32>
    %238 = arith.addf %237, %236 : vector<2x32xf32>
    %239 = arith.divf %237, %238 : vector<2x32xf32>
    %240 = vector.extract_strided_slice %227 {offsets = [0, 64], sizes = [2, 32], strides = [1, 1]} : vector<2x128xf32> to vector<2x32xf32>
    %241 = math.tanh %240 : vector<2x32xf32>
    %242 = vector.extract_strided_slice %227 {offsets = [0, 96], sizes = [2, 32], strides = [1, 1]} : vector<2x128xf32> to vector<2x32xf32>
    %243 = arith.negf %242 : vector<2x32xf32>
    %244 = math.exp %243 : vector<2x32xf32>
    %cst_59 = arith.constant 1.000000e+00 : f32
    %245 = vector.broadcast %cst_59 : f32 to vector<2x32xf32>
    %246 = arith.addf %245, %244 : vector<2x32xf32>
    %247 = arith.divf %245, %246 : vector<2x32xf32>
    %248 = arith.mulf %239, %214 : vector<2x32xf32>
    %249 = arith.mulf %233, %241 : vector<2x32xf32>
    %250 = arith.addf %248, %249 : vector<2x32xf32>
    %251 = math.tanh %250 : vector<2x32xf32>
    %252 = arith.mulf %247, %251 : vector<2x32xf32>
    %253 = arith.truncf %252 : vector<2x32xf32> to vector<2x32xbf16>
    %254 = arith.index_cast %c6_i32 : i32 to index
    %c0_60 = arith.constant 0 : index
    %c0_61 = arith.constant 0 : index
    %255 = vector.load %arg6[%254, %c0_60, %c0_61] : memref<8x2x32xbf16, #tpu.memory_space<vmem>>, vector<1x2x32xbf16>
    %256 = vector.shape_cast %255 : vector<1x2x32xbf16> to vector<2x32xbf16>
    %257 = vector.shape_cast %253 : vector<2x32xbf16> to vector<1x2x32xbf16>
    tpu.vector_store %arg6[%254, %c0_60, %c0_61], %257 {strides = array<i32>} : memref<8x2x32xbf16, #tpu.memory_space<vmem>>, vector<1x2x32xbf16>,
    %c7_i32 = arith.constant 7 : i32
    %258 = arith.index_cast %c7_i32 : i32 to index
    %c0_62 = arith.constant 0 : index
    %c0_63 = arith.constant 0 : index
    %259 = vector.load %arg4[%258, %c0_62, %c0_63] : memref<8x2x128xbf16, #tpu.memory_space<vmem>>, vector<1x2x128xbf16>
    %260 = vector.shape_cast %259 : vector<1x2x128xbf16> to vector<2x128xbf16>
    %261 = arith.extf %260 : vector<2x128xbf16> to vector<2x128xf32>
    %cst_64 = arith.constant dense<0.000000e+00> : vector<2x128xf32>
    %262 = tpu.matmul %252, %3, %cst_64 {dimension_numbers = #tpu.dot_dimension_numbers<[1], [0], [0], [1], [0, 0, 1, 1], [], []>} : vector<2x32xf32>, vector<32x128xf32>, vector<2x128xf32> -> vector<2x128xf32>
    %263 = arith.addf %261, %262 : vector<2x128xf32>
    %264 = vector.extract_strided_slice %263 {offsets = [0, 0], sizes = [2, 32], strides = [1, 1]} : vector<2x128xf32> to vector<2x32xf32>
    %265 = arith.negf %264 : vector<2x32xf32>
    %266 = math.exp %265 : vector<2x32xf32>
    %cst_65 = arith.constant 1.000000e+00 : f32
    %267 = vector.broadcast %cst_65 : f32 to vector<2x32xf32>
    %268 = arith.addf %267, %266 : vector<2x32xf32>
    %269 = arith.divf %267, %268 : vector<2x32xf32>
    %270 = vector.extract_strided_slice %263 {offsets = [0, 32], sizes = [2, 32], strides = [1, 1]} : vector<2x128xf32> to vector<2x32xf32>
    %271 = arith.negf %270 : vector<2x32xf32>
    %272 = math.exp %271 : vector<2x32xf32>
    %cst_66 = arith.constant 1.000000e+00 : f32
    %273 = vector.broadcast %cst_66 : f32 to vector<2x32xf32>
    %274 = arith.addf %273, %272 : vector<2x32xf32>
    %275 = arith.divf %273, %274 : vector<2x32xf32>
    %276 = vector.extract_strided_slice %263 {offsets = [0, 64], sizes = [2, 32], strides = [1, 1]} : vector<2x128xf32> to vector<2x32xf32>
    %277 = math.tanh %276 : vector<2x32xf32>
    %278 = vector.extract_strided_slice %263 {offsets = [0, 96], sizes = [2, 32], strides = [1, 1]} : vector<2x128xf32> to vector<2x32xf32>
    %279 = arith.negf %278 : vector<2x32xf32>
    %280 = math.exp %279 : vector<2x32xf32>
    %cst_67 = arith.constant 1.000000e+00 : f32
    %281 = vector.broadcast %cst_67 : f32 to vector<2x32xf32>
    %282 = arith.addf %281, %280 : vector<2x32xf32>
    %283 = arith.divf %281, %282 : vector<2x32xf32>
    %284 = arith.mulf %275, %250 : vector<2x32xf32>
    %285 = arith.mulf %269, %277 : vector<2x32xf32>
    %286 = arith.addf %284, %285 : vector<2x32xf32>
    %287 = math.tanh %286 : vector<2x32xf32>
    %288 = arith.mulf %283, %287 : vector<2x32xf32>
    %289 = arith.truncf %288 : vector<2x32xf32> to vector<2x32xbf16>
    %290 = arith.index_cast %c7_i32 : i32 to index
    %c0_68 = arith.constant 0 : index
    %c0_69 = arith.constant 0 : index
    %291 = vector.load %arg6[%290, %c0_68, %c0_69] : memref<8x2x32xbf16, #tpu.memory_space<vmem>>, vector<1x2x32xbf16>
    %292 = vector.shape_cast %291 : vector<1x2x32xbf16> to vector<2x32xbf16>
    %293 = vector.shape_cast %289 : vector<2x32xbf16> to vector<1x2x32xbf16>
    tpu.vector_store %arg6[%290, %c0_68, %c0_69], %293 {strides = array<i32>} : memref<8x2x32xbf16, #tpu.memory_space<vmem>>, vector<1x2x32xbf16>,
    %c8_i32 = arith.constant 8 : i32
    %c0_70 = arith.constant 0 : index
    %c0_71 = arith.constant 0 : index
    %294 = vector.load %arg7[%c0_70, %c0_71] : memref<2x32xf32, #tpu.memory_space<vmem>>, vector<2x32xf32>
    tpu.vector_store %arg7[%c0_70, %c0_71], %288 {strides = array<i32>} : memref<2x32xf32, #tpu.memory_space<vmem>>, vector<2x32xf32>,
    %c0_72 = arith.constant 0 : index
    %c0_73 = arith.constant 0 : index
    %295 = vector.load %arg8[%c0_72, %c0_73] : memref<2x32xf32, #tpu.memory_space<vmem>>, vector<2x32xf32>
    tpu.vector_store %arg8[%c0_72, %c0_73], %286 {strides = array<i32>} : memref<2x32xf32, #tpu.memory_space<vmem>>, vector<2x32xf32>,
    return
  }
  func.func @transform_0(%arg0: i32) -> (i32, i32) {
    %c0_i32 = arith.constant 0 : i32
    %c0_i32_0 = arith.constant 0 : i32
    %c0_i32_1 = arith.constant 0 : i32
    return %c0_i32, %c0_i32_0 : i32, i32
  }
  func.func @transform_1(%arg0: i32) -> (i32, i32) {
    %c0_i32 = arith.constant 0 : i32
    %c0_i32_0 = arith.constant 0 : i32
    %c0_i32_1 = arith.constant 0 : i32
    return %c0_i32, %c0_i32_0 : i32, i32
  }
  func.func @transform_2(%arg0: i32) -> (i32, i32) {
    %c0_i32 = arith.constant 0 : i32
    %c0_i32_0 = arith.constant 0 : i32
    %c0_i32_1 = arith.constant 0 : i32
    return %c0_i32, %c0_i32_0 : i32, i32
  }
  func.func @transform_3(%arg0: i32) -> (i32, i32, i32) {
    %c0_i32 = arith.constant 0 : i32
    %c0_i32_0 = arith.constant 0 : i32
    %c0_i32_1 = arith.constant 0 : i32
    return %arg0, %c0_i32, %c0_i32_0 : i32, i32, i32
  }
  func.func @transform_4(%arg0: i32) -> (i32, i32) {
    %c0_i32 = arith.constant 0 : i32
    %c0_i32_0 = arith.constant 0 : i32
    %c0_i32_1 = arith.constant 0 : i32
    return %c0_i32, %c0_i32_0 : i32, i32
  }
  func.func @transform_5(%arg0: i32) -> (i32, i32, i32) {
    %c0_i32 = arith.constant 0 : i32
    %c0_i32_0 = arith.constant 0 : i32
    %c0_i32_1 = arith.constant 0 : i32
    return %arg0, %c0_i32, %c0_i32_0 : i32, i32, i32
  }
}

</mosaic_0001>

<bundles_post_ra>
// kernel: topic_guided_vae_forward.7
= control target key start
LH: loop header
LB: loop body
LE: loop exit
PB: predicated region body
PF: predicated region fallthrough
CT: control target
= control target key end

     0   :  { %v121_v0 = vmov 0.0   ;;  %vm122_vm0 = vmmov 0   ;;  %vm37_vm1 = vcmask 130048   ;;  %s155_s1 = inlined_call_operand.vmem [shape: bf16[16,128], index: 1, kind: input, shape index: {}]   ;;  %s156_s0 = inlined_call_operand.vmem [shape: bf16[16,16], index: 0, kind: input, shape index: {}]   ;;  %s157_s2 = inlined_call_operand.vmem [shape: f32[1,128], index: 2, kind: input, shape index: {}]   ;;  %s158_s3 = inlined_call_operand.vmem [shape: bf16[16,128], index: 3, kind: output, shape index: {}]  }
   0x1   :  { %111 = vmatprep.subr.bf16.mxu0 %v121_v0  ;;  %v119_v1 = vld [vmem:[%s155_s1] sm:$0xff]   ;;  %113 = vmatprep.mubr.msk.bf16.mxu0 %vm122_vm0, %v121_v0 }
   0x2   :  { %v120_v2 = vld [vmem:[%s156_s0] sm:$0xff]   ;;  %112 = vmatpush3.bf16.msra.mxu0 %v119_v1 }
   0x3   :  { %v96_v4 = vld [vmem:[%s157_s2] ss:$0 sm:$0xff] }
   0x5   :  { %114 = vmatmul.mubr.msk.bf16.vlgmr.msra.gmra.mxu0 %vm37_vm1, %v120_v2 }
  0xc5   :  { %v75_v3 = vpop.f32.mrf.mxu0 }
  0xc6   :  { %v76_v7 = vadd.f32 %v96_v4, %v75_v3 }
  0xc7   :  { %v115_v5 = vpop.f32.mrf.mxu0 }
  0xc9   :  { %v78_v6 = vpop.f32.mrf.mxu0 }
  0xca   :  { %v79_v8 = vadd.f32 %v96_v4, %v78_v6 }
  0xcb   :  { %v116_v9 = vpop.f32.mrf.mxu0 }
  0xcc   :  { %v107_v10 = vpack.c.bf16 %v79_v8, %v76_v7 }
  0xce   :  { %108 = vst [vmem:[%s158_s3] sm:$0xff] %v107_v10  }

// kernel: topic_guided_vae_forward.9
= control target key start
LH: loop header
LB: loop body
LE: loop exit
PB: predicated region body
PF: predicated region fallthrough
CT: control target
= control target key end

     0   :  { %v155_v1 = vmov 0.0   ;;  %vm156_vm0 = vmmov 0   ;;  %s195_s0 = inlined_call_operand.vmem [shape: bf16[16,32], index: 0, kind: input, shape index: {}]   ;;  %s196_s1 = inlined_call_operand.vmem [shape: bf16[32,32], index: 1, kind: input, shape index: {}]   ;;  %s197_s2 = inlined_call_operand.vmem [shape: f32[1,32], index: 2, kind: input, shape index: {}]   ;;  %s198_s3 = inlined_call_operand.hbm [shape: f32[16,32], index: 3, kind: output, shape index: {}]  }
   0x1   :  { %v130_v0 = vld [vmem:[%s196_s1 + $0x8] sm:$0xff]   ;;  %117 = vmatprep.subr.bf16.mxu0 %v155_v1  ;;  %v131_v2 = vld [vmem:[%s196_s1] sm:$0xff]   ;;  %121 = vmatprep.mubr.msk.bf16.mxu0 %vm156_vm0, %v155_v1 }
   0x2   :  { %118 = vmatpush3.bf16.msra.mxu0 %v130_v0 }
   0x3   :  { %119 = vmatprep.subr.bf16.mxu0 %v155_v1 }
   0x4   :  { %8 = vsyncpa [#allocation3], 0  ;;  %v132_v3 = vld [vmem:[%s195_s0] sm:$0xff]   ;;  %vm46_vm1 = vcmask 261120   ;;  %s157_s20 = smov [#allocation2]  }
   0x5   :  { %v109_v4 = vld [vmem:[%s197_s2] ss:$0 sm:$0xff]  ;;  %s98_s21 = sshll.u32 %s157_s20, 4  ;;  %s99_s21 = int_to_ptr.vmem [resolvable:$true] %s98_s21 }
   0x6   :  { %120 = vmatpush3.bf16.msra.mxu0 %v131_v2  ;;  %s133_s1 = scalar_lea.vmem %s99_s21, 256  ;;  %p138_p1 = scmp.lt.s32.totalorder %s99_s21, %s99_s21 }
   0x7   :  { %p134_p0 = scmp.ne.s32.totalorder %s99_s21, %s133_s1  ;;  %p139_p2 = scmp.lt.s32.totalorder %s133_s1, %s133_s1 }
   0x9   :  { %122 = vmatmul.mubr.msk.bf16.vlgmr.msra.gmra.mxu0 %vm46_vm1, %v132_v3  ;;  %p140_p3 = por %p139_p2, %p138_p1 }
   0xb   :  { %p141_p4 = pnand %p140_p3, %p134_p0 }
  0xc9   :  { %v84_v5 = vpop.f32.mrf.mxu0 }
  0xca   :  { %v85_v6 = vadd.f32 %v109_v4, %v84_v5 }
  0xcb   :  { %v123_v7 = vpop.f32.mrf.mxu0 }
  0xcc   :  { %91 = vst.msk [vmem:[#allocation2] sm:$0xff] %vm46_vm1, %v85_v6 }
  0xcd   :  { %v87_v8 = vpop.f32.mrf.mxu0 }
  0xce   :  { %v88_v9 = vadd.f32 %v109_v4, %v87_v8 }
  0xcf   :  { %v124_v10 = vpop.f32.mrf.mxu0 }
  0xd0   :  { %92 = vst.msk [vmem:[#allocation2 + $0x8] sm:$0xff] %vm46_vm1, %v88_v9 }
  0xd1   :  { %144 = shalt.err (!%p141_p4)
}
  0xd2   :  { %s158_s0 = smov 128   ;;  %s159_s2 = smov 8  }
  0xd3   :  { %104 = dma.vmem_to_hbm [thread:$0]  %s99_s21, 256, %s198_s3, [#allocation3], %s158_s0, %s158_s0, %s159_s2  }
  0xd4   :  { %153 = dma.done.wait [#allocation3], 256  }
  0xd5   :  { %154 = vsyncadd [#allocation3], 4294967040 }
  0xd6   :  { %108 = vsyncpa [#allocation3], 1 }

// kernel: topic_guided_vae_forward.6
= control target key start
LH: loop header
LB: loop body
LE: loop exit
PB: predicated region body
PF: predicated region fallthrough
CT: control target
= control target key end

     0   :  { %14 = vsyncpa [#allocation5], 0  ;;  %vm32_vm0 = vcmask 254976   ;;  %v1382_v1 = vmov 0.0   ;;  %vm1383_vm1 = vmmov 0   ;;  %s1668_s0 = inlined_call_operand.vmem [shape: bf16[8,2,128], index: 0, kind: input, shape index: {}]   ;;  %s1669_s1 = inlined_call_operand.vmem [shape: f32[2,128], index: 1, kind: input, shape index: {}]   ;;  %s1670_s2 = inlined_call_operand.vmem [shape: f32[32,128], index: 2, kind: input, shape index: {}]   ;;  %s1671_s3 = inlined_call_operand.vmem [shape: f32[32,16], index: 3, kind: input, shape index: {}]   ;;  %s1672_s4 = inlined_call_operand.vmem [shape: f32[1,16], index: 4, kind: input, shape index: {}]   ;;  %s1673_s5 = inlined_call_operand.vmem [shape: f32[2,8], index: 5, kind: input, shape index: {}]   ;;  %s1674_s6 = inlined_call_operand.hbm [shape: f32[2,8], index: 6, kind: output, shape index: {0}]   ;;  %s1675_s7 = inlined_call_operand.hbm [shape: f32[2,8], index: 7, kind: output, shape index: {1}]   ;;  %s1676_s8 = inlined_call_operand.vmem [shape: f32[2,8], index: 8, kind: output, shape index: {2}]  }
   0x1   :  { %v1439_v0 = vld [vmem:[%s1670_s2 + $0x18] sm:$0xff]  ;;  %1164 = vmatprep.subr.mxu0 %v1382_v1  ;;  %v1445_v2 = vld [vmem:[%s1670_s2 + $0x10] sm:$0xff]  ;;  %1172 = vmatprep.mubr.msk.f32.mxu0 %vm1383_vm1, %v1382_v1  ;;  %33 = vst.msk [vmem:[#allocation2] sm:$0x3] %vm32_vm0, %v1382_v1  ;;  %34 = vst.msk [vmem:[#allocation3] sm:$0x3] %vm32_vm0, %v1382_v1 }
   0x2   :  { %1165 = vmatpush3.msra.mxu0 %v1439_v0  ;;  %1175 = vmatprep.subr.mxu1 %v1382_v1 }
   0x3   :  { %15 = vsyncpa [#allocation7], 0  ;;  %1166 = vmatprep.subr.mxu0 %v1382_v1  ;;  %v1459_v3 = vld [vmem:[%s1670_s2 + $0x8] sm:$0xff]  ;;  %1176 = vmatpush3.msra.mxu1 %v1439_v0  ;;  %v1468_v4 = vld [vmem:[%s1670_s2] sm:$0xff]  ;;  %vm45_vm2 = vcmask 261120   ;;  %s1384_s16 = smov 64   ;;  %v163_v28 = vlaneseq }
   0x4   :  { %1167 = vmatpush3.msra.mxu0 %v1445_v2  ;;  %1177 = vmatprep.subr.mxu1 %v1382_v1  ;;  %v42_v6 = vld [vmem:[%s1668_s0] sm:$0x1]  ;;  %s1385_s17 = smov 32   ;;  %v1386_v26 = vmov 1983009808   ;;  %vm1043_vm3 = vcmask 58368  }
   0x5   :  { %1168 = vmatprep.subr.mxu0 %v1382_v1  ;;  %1178 = vmatpush3.msra.mxu1 %v1445_v2  ;;  %v43_v7 = vunpack.c.l.bf16 %v42_v6  ;;  %v1499_v8 = vld [vmem:[%s1669_s1] sm:$0x3]  ;;  %v161_v27 = vunpack.c.l.s4 %v1386_v26  ;;  %v164_v30 = vshrl.u32 %v163_v28, 7  ;;  %v1099_v57 = vld [vmem:[%s1668_s0 + $0x2] sm:$0x1] }
   0x6   :  { %1169 = vmatpush3.msra.mxu0 %v1459_v3  ;;  %1179 = vmatprep.subr.mxu1 %v1382_v1  ;;  %v1096_v36 = vld [vmem:[%s1668_s0 + $0x1] sm:$0x1]  ;;  %v268_v58 = vunpack.c.l.bf16 %v1099_v57 }
   0x7   :  { %1170 = vmatprep.subr.mxu0 %v1382_v1  ;;  %1180 = vmatpush3.msra.mxu1 %v1459_v3  ;;  %v44_v9 = vadd.f32 %v43_v7, %v1499_v8  ;;  %v162_v29 = vunpack.c.0.s8 %v161_v27  ;;  %v157_v37 = vunpack.c.l.bf16 %v1096_v36 }
   0x8   :  { %1171 = vmatpush3.msra.mxu0 %v1468_v4  ;;  %v40_v5 = vld [vmem:[#allocation2] sm:$0x3]  ;;  %1181 = vmatprep.subr.mxu1 %v1382_v1  ;;  %v1095_v14 = vld.sshfl [vmem:[#allocation3] sm:$0x3 pattern:$0x76325410]  ;;  %v269_v59 = vadd.f32 %v268_v58, %v1499_v8 }
   0x9   :  { %1173 = vmatmul.mubr.msk.f32.vlgmr.msra.gmra.mxu0 %vm45_vm2, %v40_v5  ;;  %1182 = vmatpush3.msra.mxu1 %v1468_v4  ;;  %v1506_v31 = vsub.s32 %v162_v29, %v164_v30  ;;  %v158_v38 = vadd.f32 %v157_v37, %v1499_v8 }
   0xa   :  { %1183 = vmatprep.mubr.msk.f32.mxu1 %vm1383_vm1, %v1382_v1  ;;  %1186 = vmatprep.subr.mxu0 %v1382_v1 }
   0xb   :  { %1187 = vmatpush3.msra.mxu0 %v1439_v0  ;;  %1194 = vmatprep.mubr.msk.f32.mxu0 %vm1383_vm1, %v1382_v1 }
   0xc   :  { %1188 = vmatprep.subr.mxu0 %v1382_v1  ;;  %1197 = vmatprep.subr.mxu1 %v1382_v1 }
   0xd   :  { %1189 = vmatpush3.msra.mxu0 %v1445_v2 }
   0xe   :  { %1190 = vmatprep.subr.mxu0 %v1382_v1 }
   0xf   :  { %1191 = vmatpush3.msra.mxu0 %v1459_v3 }
  0x10   :  { %1192 = vmatprep.subr.mxu0 %v1382_v1 }
  0x11   :  { %1193 = vmatpush3.msra.mxu0 %v1468_v4 }
  0x12   :  { %1208 = vmatprep.subr.mxu0 %v1382_v1 }
  0xc9   :  { %v115_v10 = vpop.f32.mrf.mxu0 }
  0xca   :  { %v119_v11 = vadd.f32 %v115_v10, %v44_v9 }
  0xcb   :  { %v1174_v12 = vpop.f32.mrf.mxu0 }
  0xcc   :  { %1272 = vtanh.f32 %v119_v11  ;;  %v1094_v15 = vmul.f32 -1.442695, %v119_v11 }
  0xce   :  { %1274 = vpow2.f32 %v1094_v15 }
  0xd9   :  { %v1273_v13 = vpop.eup %1272 }
  0xda   :  { %140 = vrot.lane.b32.xlu0 %v1273_v13, %s1384_s16 }
  0xdb   :  { %v1275_v16 = vpop.eup %1274 }
  0xdc   :  { %v123_v17 = vadd.f32 1.0, %v1275_v16 }
  0xde   :  { %135 = vrot.lane.b32.xlu0 %v1095_v14, %s1385_s17  ;;  %1276 = vrcp.f32 %v123_v17 }
  0xeb   :  { %v1277_v18 = vpop.eup %1276 }
 0x14c   :  { %v141_v19 = vpop.permute.xlu0 %140 }
 0x14d   :  { %v143_v20 = vmul.f32 %v1277_v18, %v141_v19 }
 0x14f   :  { %145 = vrot.lane.b32.xlu1 %v143_v20, %s1385_s17  ;;  %v1102_v20 = vld [vmem:[%s1668_s0 + $0x3] sm:$0x1] }
 0x150   :  { %v136_v21 = vpop.permute.xlu0 %135 }
 0x151   :  { %v138_v22 = vmul.f32 %v1277_v18, %v136_v21  ;;  %v379_v21 = vunpack.c.l.bf16 %v1102_v20 }
 0x1c1   :  { %v146_v23 = vpop.permute.xlu1 %145 }
 0x1c2   :  { %v148_v24 = vadd.f32 %v146_v23, %v138_v22  ;;  %v380_v22 = vadd.f32 %v379_v21, %v1499_v8 }
 0x1c4   :  { %1278 = vtanh.f32 %v148_v24 }
 0x1d1   :  { %v1279_v25 = vpop.eup %1278 }
 0x1d2   :  { %151 = vrot.lane.b32.xlu1 %v1279_v25, %s1384_s16 }
 0x244   :  { %v152_v32 = vpop.permute.xlu1 %151 }
 0x245   :  { %v154_v33 = vmul.f32 %v1277_v18, %v152_v32 }
 0x247   :  { %v166_v34 = vrot.slane %v154_v33, %v1506_v31 }
 0x249   :  { %167 = vrot.lane.b32.xlu0 %v166_v34, %s1385_s17 }
 0x2bb   :  { %v168_v35 = vpop.permute.xlu0 %167 }
 0x2bc   :  { %1184 = vmatmul.mubr.msk.f32.vlgmr.msra.gmra.mxu1 %vm45_vm2, %v168_v35 }
 0x2bd   :  { %1198 = vmatpush3.msra.mxu1 %v1439_v0  ;;  %1205 = vmatprep.mubr.msk.f32.mxu1 %vm1383_vm1, %v1382_v1 }
 0x2be   :  { %1199 = vmatprep.subr.mxu1 %v1382_v1 }
 0x2bf   :  { %1200 = vmatpush3.msra.mxu1 %v1445_v2 }
 0x2c0   :  { %1201 = vmatprep.subr.mxu1 %v1382_v1 }
 0x2c1   :  { %1202 = vmatpush3.msra.mxu1 %v1459_v3 }
 0x2c2   :  { %1203 = vmatprep.subr.mxu1 %v1382_v1 }
 0x2c3   :  { %1204 = vmatpush3.msra.mxu1 %v1468_v4 }
 0x2c4   :  { %1219 = vmatprep.subr.mxu1 %v1382_v1 }
 0x37c   :  { %v237_v39 = vpop.f32.mrf.mxu1 }
 0x37d   :  { %v241_v40 = vadd.f32 %v237_v39, %v158_v38 }
 0x37e   :  { %v1185_v41 = vpop.f32.mrf.mxu1 }
 0x37f   :  { %1280 = vtanh.f32 %v241_v40  ;;  %v1098_v43 = vmul.f32 -1.442695, %v241_v40 }
 0x381   :  { %1282 = vpow2.f32 %v1098_v43 }
 0x38c   :  { %v1281_v42 = vpop.eup %1280 }
 0x38d   :  { %251 = vrot.lane.b32.xlu1 %v1281_v42, %s1384_s16  ;;  %v1105_v42 = vld [vmem:[%s1668_s0 + $0x4] sm:$0x1] }
 0x38e   :  { %v1283_v44 = vpop.eup %1282  ;;  %v490_v43 = vunpack.c.l.bf16 %v1105_v42 }
 0x38f   :  { %v245_v45 = vadd.f32 1.0, %v1283_v44 }
 0x390   :  { %v491_v44 = vadd.f32 %v490_v43, %v1499_v8 }
 0x391   :  { %1284 = vrcp.f32 %v245_v45 }
 0x39e   :  { %v1285_v46 = vpop.eup %1284 }
 0x39f   :  { %v249_v49 = vmul.f32 %v1285_v46, %v148_v24 }
 0x3ff   :  { %v252_v47 = vpop.permute.xlu1 %251 }
 0x400   :  { %v254_v48 = vmul.f32 %v1285_v46, %v252_v47 }
 0x402   :  { %256 = vrot.lane.b32.xlu0 %v254_v48, %s1385_s17 }
 0x474   :  { %v257_v50 = vpop.permute.xlu0 %256 }
 0x475   :  { %v259_v51 = vadd.f32 %v257_v50, %v249_v49 }
 0x477   :  { %1286 = vtanh.f32 %v259_v51 }
 0x484   :  { %v1287_v52 = vpop.eup %1286 }
 0x485   :  { %262 = vrot.lane.b32.xlu1 %v1287_v52, %s1384_s16 }
 0x4f7   :  { %v263_v53 = vpop.permute.xlu1 %262 }
 0x4f8   :  { %v265_v54 = vmul.f32 %v1285_v46, %v263_v53 }
 0x4fa   :  { %v277_v55 = vrot.slane %v265_v54, %v1506_v31 }
 0x4fc   :  { %278 = vrot.lane.b32.xlu0 %v277_v55, %s1385_s17 }
 0x56e   :  { %v279_v56 = vpop.permute.xlu0 %278 }
 0x56f   :  { %1195 = vmatmul.mubr.msk.f32.vlgmr.msra.gmra.mxu0 %vm45_vm2, %v279_v56 }
 0x570   :  { %1209 = vmatpush3.msra.mxu0 %v1439_v0  ;;  %1216 = vmatprep.mubr.msk.f32.mxu0 %vm1383_vm1, %v1382_v1 }
 0x571   :  { %1210 = vmatprep.subr.mxu0 %v1382_v1 }
 0x572   :  { %1211 = vmatpush3.msra.mxu0 %v1445_v2 }
 0x573   :  { %1212 = vmatprep.subr.mxu0 %v1382_v1 }
 0x574   :  { %1213 = vmatpush3.msra.mxu0 %v1459_v3 }
 0x575   :  { %1214 = vmatprep.subr.mxu0 %v1382_v1 }
 0x576   :  { %1215 = vmatpush3.msra.mxu0 %v1468_v4 }
 0x577   :  { %1230 = vmatprep.subr.mxu0 %v1382_v1 }
 0x62f   :  { %v348_v60 = vpop.f32.mrf.mxu0 }
 0x630   :  { %v352_v61 = vadd.f32 %v348_v60, %v269_v59 }
 0x631   :  { %v1196_v62 = vpop.f32.mrf.mxu0 }
 0x632   :  { %1288 = vtanh.f32 %v352_v61  ;;  %v1101_v5 = vmul.f32 -1.442695, %v352_v61 }
 0x634   :  { %1290 = vpow2.f32 %v1101_v5 }
 0x63f   :  { %v1289_v63 = vpop.eup %1288 }
 0x640   :  { %362 = vrot.lane.b32.xlu1 %v1289_v63, %s1384_s16  ;;  %v1108_v63 = vld [vmem:[%s1668_s0 + $0x5] sm:$0x1] }
 0x641   :  { %v1291_v6 = vpop.eup %1290 }
 0x642   :  { %v356_v7 = vadd.f32 1.0, %v1291_v6 }
 0x644   :  { %1292 = vrcp.f32 %v356_v7 }
 0x651   :  { %v1293_v9 = vpop.eup %1292 }
 0x652   :  { %v360_v12 = vmul.f32 %v1293_v9, %v259_v51 }
 0x6b2   :  { %v363_v10 = vpop.permute.xlu1 %362 }
 0x6b3   :  { %v365_v11 = vmul.f32 %v1293_v9, %v363_v10 }
 0x6b5   :  { %367 = vrot.lane.b32.xlu0 %v365_v11, %s1385_s17 }
 0x727   :  { %v368_v13 = vpop.permute.xlu0 %367 }
 0x728   :  { %v370_v14 = vadd.f32 %v368_v13, %v360_v12 }
 0x72a   :  { %1294 = vtanh.f32 %v370_v14 }
 0x737   :  { %v1295_v15 = vpop.eup %1294 }
 0x738   :  { %373 = vrot.lane.b32.xlu1 %v1295_v15, %s1384_s16 }
 0x7aa   :  { %v374_v16 = vpop.permute.xlu1 %373 }
 0x7ab   :  { %v376_v17 = vmul.f32 %v1293_v9, %v374_v16 }
 0x7ad   :  { %v388_v18 = vrot.slane %v376_v17, %v1506_v31 }
 0x7af   :  { %389 = vrot.lane.b32.xlu0 %v388_v18, %s1385_s17 }
 0x821   :  { %v390_v19 = vpop.permute.xlu0 %389 }
 0x822   :  { %1206 = vmatmul.mubr.msk.f32.vlgmr.msra.gmra.mxu1 %vm45_vm2, %v390_v19 }
 0x823   :  { %1220 = vmatpush3.msra.mxu1 %v1439_v0  ;;  %1227 = vmatprep.mubr.msk.f32.mxu1 %vm1383_vm1, %v1382_v1 }
 0x824   :  { %1221 = vmatprep.subr.mxu1 %v1382_v1 }
 0x825   :  { %1222 = vmatpush3.msra.mxu1 %v1445_v2 }
 0x826   :  { %1223 = vmatprep.subr.mxu1 %v1382_v1 }
 0x827   :  { %1224 = vmatpush3.msra.mxu1 %v1459_v3 }
 0x828   :  { %1225 = vmatprep.subr.mxu1 %v1382_v1 }
 0x829   :  { %1226 = vmatpush3.msra.mxu1 %v1468_v4 }
 0x82a   :  { %1241 = vmatprep.subr.mxu1 %v1382_v1 }
 0x8e2   :  { %v459_v23 = vpop.f32.mrf.mxu1 }
 0x8e3   :  { %v463_v24 = vadd.f32 %v459_v23, %v380_v22  ;;  %v1111_v22 = vld [vmem:[%s1668_s0 + $0x6] sm:$0x1] }
 0x8e4   :  { %v1207_v25 = vpop.f32.mrf.mxu1  ;;  %v712_v23 = vunpack.c.l.bf16 %v1111_v22 }
 0x8e5   :  { %1296 = vtanh.f32 %v463_v24  ;;  %v1104_v27 = vmul.f32 -1.442695, %v463_v24 }
 0x8e6   :  { %v713_v24 = vadd.f32 %v712_v23, %v1499_v8 }
 0x8e7   :  { %1298 = vpow2.f32 %v1104_v27 }
 0x8f2   :  { %v1297_v26 = vpop.eup %1296 }
 0x8f3   :  { %473 = vrot.lane.b32.xlu1 %v1297_v26, %s1384_s16 }
 0x8f4   :  { %v1299_v28 = vpop.eup %1298 }
 0x8f5   :  { %v467_v29 = vadd.f32 1.0, %v1299_v28 }
 0x8f7   :  { %1300 = vrcp.f32 %v467_v29 }
 0x904   :  { %v1301_v30 = vpop.eup %1300 }
 0x905   :  { %v471_v34 = vmul.f32 %v1301_v30, %v370_v14 }
 0x965   :  { %v474_v32 = vpop.permute.xlu1 %473 }
 0x966   :  { %v476_v33 = vmul.f32 %v1301_v30, %v474_v32 }
 0x968   :  { %478 = vrot.lane.b32.xlu0 %v476_v33, %s1385_s17 }
 0x9da   :  { %v479_v35 = vpop.permute.xlu0 %478 }
 0x9db   :  { %v481_v36 = vadd.f32 %v479_v35, %v471_v34 }
 0x9dd   :  { %1302 = vtanh.f32 %v481_v36 }
 0x9ea   :  { %v1303_v37 = vpop.eup %1302 }
 0x9eb   :  { %484 = vrot.lane.b32.xlu1 %v1303_v37, %s1384_s16 }
 0xa5d   :  { %v485_v38 = vpop.permute.xlu1 %484 }
 0xa5e   :  { %v487_v39 = vmul.f32 %v1301_v30, %v485_v38 }
 0xa60   :  { %v499_v40 = vrot.slane %v487_v39, %v1506_v31 }
 0xa62   :  { %500 = vrot.lane.b32.xlu0 %v499_v40, %s1385_s17 }
 0xad4   :  { %v501_v41 = vpop.permute.xlu0 %500 }
 0xad5   :  { %1217 = vmatmul.mubr.msk.f32.vlgmr.msra.gmra.mxu0 %vm45_vm2, %v501_v41 }
 0xad6   :  { %1231 = vmatpush3.msra.mxu0 %v1439_v0  ;;  %1238 = vmatprep.mubr.msk.f32.mxu0 %vm1383_vm1, %v1382_v1 }
 0xad7   :  { %1232 = vmatprep.subr.mxu0 %v1382_v1 }
 0xad8   :  { %1233 = vmatpush3.msra.mxu0 %v1445_v2 }
 0xad9   :  { %1234 = vmatprep.subr.mxu0 %v1382_v1 }
 0xada   :  { %1235 = vmatpush3.msra.mxu0 %v1459_v3 }
 0xadb   :  { %1236 = vmatprep.subr.mxu0 %v1382_v1 }
 0xadc   :  { %1237 = vmatpush3.msra.mxu0 %v1468_v4 }
 0xadd   :  { %1252 = vmatprep.subr.mxu0 %v1382_v1 }
 0xb95   :  { %v570_v45 = vpop.f32.mrf.mxu0 }
 0xb96   :  { %v574_v46 = vadd.f32 %v570_v45, %v491_v44  ;;  %v1114_v44 = vld [vmem:[%s1668_s0 + $0x7] sm:$0x1] }
 0xb97   :  { %v1218_v47 = vpop.f32.mrf.mxu0  ;;  %v823_v45 = vunpack.c.l.bf16 %v1114_v44 }
 0xb98   :  { %1304 = vtanh.f32 %v574_v46  ;;  %v1107_v49 = vmul.f32 -1.442695, %v574_v46 }
 0xb99   :  { %v824_v46 = vadd.f32 %v823_v45, %v1499_v8 }
 0xb9a   :  { %1306 = vpow2.f32 %v1107_v49 }
 0xba5   :  { %v1305_v48 = vpop.eup %1304 }
 0xba6   :  { %584 = vrot.lane.b32.xlu1 %v1305_v48, %s1384_s16 }
 0xba7   :  { %v1307_v50 = vpop.eup %1306 }
 0xba8   :  { %v578_v51 = vadd.f32 1.0, %v1307_v50 }
 0xbaa   :  { %1308 = vrcp.f32 %v578_v51 }
 0xbb7   :  { %v1309_v52 = vpop.eup %1308 }
 0xbb8   :  { %v582_v55 = vmul.f32 %v1309_v52, %v481_v36 }
 0xc18   :  { %v585_v53 = vpop.permute.xlu1 %584 }
 0xc19   :  { %v587_v54 = vmul.f32 %v1309_v52, %v585_v53 }
 0xc1b   :  { %589 = vrot.lane.b32.xlu0 %v587_v54, %s1385_s17 }
 0xc8d   :  { %v590_v56 = vpop.permute.xlu0 %589 }
 0xc8e   :  { %v592_v57 = vadd.f32 %v590_v56, %v582_v55 }
 0xc90   :  { %1310 = vtanh.f32 %v592_v57 }
 0xc9d   :  { %v1311_v58 = vpop.eup %1310 }
 0xc9e   :  { %595 = vrot.lane.b32.xlu1 %v1311_v58, %s1384_s16 }
 0xd10   :  { %v596_v59 = vpop.permute.xlu1 %595 }
 0xd11   :  { %v598_v60 = vmul.f32 %v1309_v52, %v596_v59  ;;  %v963_v59 = vld [vmem:[%s1671_s3 + $0x18] sm:$0xff] }
 0xd13   :  { %v610_v61 = vrot.slane %v598_v60, %v1506_v31  ;;  %v962_v60 = vld [vmem:[%s1671_s3 + $0x10] sm:$0xff] }
 0xd15   :  { %611 = vrot.lane.b32.xlu0 %v610_v61, %s1385_s17  ;;  %v961_v61 = vld [vmem:[%s1671_s3 + $0x8] sm:$0xff] }
 0xd87   :  { %v612_v62 = vpop.permute.xlu0 %611 }
 0xd88   :  { %1228 = vmatmul.mubr.msk.f32.vlgmr.msra.gmra.mxu1 %vm45_vm2, %v612_v62  ;;  %v960_v62 = vld [vmem:[%s1671_s3] sm:$0xff] }
 0xd89   :  { %1242 = vmatpush3.msra.mxu1 %v1439_v0  ;;  %1249 = vmatprep.mubr.msk.f32.mxu1 %vm1383_vm1, %v1382_v1  ;;  %v601_v0 = vunpack.c.l.bf16 %v1108_v63 }
 0xd8a   :  { %1243 = vmatprep.subr.mxu1 %v1382_v1 }
 0xd8b   :  { %1244 = vmatpush3.msra.mxu1 %v1445_v2  ;;  %v602_v5 = vadd.f32 %v601_v0, %v1499_v8 }
 0xd8c   :  { %1245 = vmatprep.subr.mxu1 %v1382_v1 }
 0xd8d   :  { %1246 = vmatpush3.msra.mxu1 %v1459_v3 }
 0xd8e   :  { %1247 = vmatprep.subr.mxu1 %v1382_v1 }
 0xd8f   :  { %1248 = vmatpush3.msra.mxu1 %v1468_v4 }
 0xe48   :  { %v681_v6 = vpop.f32.mrf.mxu1 }
 0xe49   :  { %v685_v7 = vadd.f32 %v681_v6, %v602_v5 }
 0xe4a   :  { %v1229_v9 = vpop.f32.mrf.mxu1 }
 0xe4b   :  { %1312 = vtanh.f32 %v685_v7  ;;  %v1110_v10 = vmul.f32 -1.442695, %v685_v7  ;;  %v1117_v9 = vld [vmem:[%s1672_s4] ss:$0 sm:$0xff] }
 0xe4d   :  { %1314 = vpow2.f32 %v1110_v10 }
 0xe58   :  { %v1313_v2 = vpop.eup %1312 }
 0xe59   :  { %695 = vrot.lane.b32.xlu1 %v1313_v2, %s1384_s16 }
 0xe5a   :  { %v1315_v3 = vpop.eup %1314 }
 0xe5b   :  { %v689_v11 = vadd.f32 1.0, %v1315_v3 }
 0xe5d   :  { %1316 = vrcp.f32 %v689_v11 }
 0xe6a   :  { %v1317_v4 = vpop.eup %1316 }
 0xe6b   :  { %v693_v14 = vmul.f32 %v1317_v4, %v592_v57 }
 0xecb   :  { %v696_v12 = vpop.permute.xlu1 %695 }
 0xecc   :  { %v698_v13 = vmul.f32 %v1317_v4, %v696_v12 }
 0xece   :  { %700 = vrot.lane.b32.xlu0 %v698_v13, %s1385_s17 }
 0xf40   :  { %v701_v15 = vpop.permute.xlu0 %700 }
 0xf41   :  { %v703_v16 = vadd.f32 %v701_v15, %v693_v14 }
 0xf43   :  { %1318 = vtanh.f32 %v703_v16 }
 0xf50   :  { %v1319_v17 = vpop.eup %1318 }
 0xf51   :  { %706 = vrot.lane.b32.xlu1 %v1319_v17, %s1384_s16 }
 0xfc3   :  { %v707_v18 = vpop.permute.xlu1 %706 }
 0xfc4   :  { %v709_v19 = vmul.f32 %v1317_v4, %v707_v18 }
 0xfc6   :  { %v721_v20 = vrot.slane %v709_v19, %v1506_v31 }
 0xfc8   :  { %722 = vrot.lane.b32.xlu0 %v721_v20, %s1385_s17 }
0x103a   :  { %v723_v21 = vpop.permute.xlu0 %722 }
0x103b   :  { %1239 = vmatmul.mubr.msk.f32.vlgmr.msra.gmra.mxu0 %vm45_vm2, %v723_v21 }
0x103c   :  { %1260 = vmatprep.mubr.msk.f32.mxu0 %vm1383_vm1, %v1382_v1  ;;  %1253 = vmatpush3.msra.mxu0 %v963_v59 }
0x103d   :  { %1254 = vmatprep.subr.mxu0 %v1382_v1 }
0x103e   :  { %1255 = vmatpush3.msra.mxu0 %v962_v60 }
0x103f   :  { %1256 = vmatprep.subr.mxu0 %v1382_v1 }
0x1040   :  { %1257 = vmatpush3.msra.mxu0 %v961_v61 }
0x1041   :  { %1258 = vmatprep.subr.mxu0 %v1382_v1 }
0x1042   :  { %1259 = vmatpush3.msra.mxu0 %v960_v62 }
0x10fb   :  { %v792_v25 = vpop.f32.mrf.mxu0 }
0x10fc   :  { %v796_v26 = vadd.f32 %v792_v25, %v713_v24 }
0x10fd   :  { %v1240_v27 = vpop.f32.mrf.mxu0 }
0x10fe   :  { %1320 = vtanh.f32 %v796_v26  ;;  %v1113_v29 = vmul.f32 -1.442695, %v796_v26 }
0x1100   :  { %1322 = vpow2.f32 %v1113_v29 }
0x110b   :  { %v1321_v28 = vpop.eup %1320 }
0x110c   :  { %806 = vrot.lane.b32.xlu1 %v1321_v28, %s1384_s16 }
0x110d   :  { %v1323_v30 = vpop.eup %1322 }
0x110e   :  { %v800_v32 = vadd.f32 1.0, %v1323_v30 }
0x1110   :  { %1324 = vrcp.f32 %v800_v32 }
0x111d   :  { %v1325_v33 = vpop.eup %1324 }
0x111e   :  { %v804_v36 = vmul.f32 %v1325_v33, %v703_v16 }
0x117e   :  { %v807_v34 = vpop.permute.xlu1 %806 }
0x117f   :  { %v809_v35 = vmul.f32 %v1325_v33, %v807_v34 }
0x1181   :  { %811 = vrot.lane.b32.xlu0 %v809_v35, %s1385_s17 }
0x11f3   :  { %v812_v37 = vpop.permute.xlu0 %811 }
0x11f4   :  { %v814_v38 = vadd.f32 %v812_v37, %v804_v36 }
0x11f6   :  { %1326 = vtanh.f32 %v814_v38 }
0x1203   :  { %v1327_v39 = vpop.eup %1326 }
0x1204   :  { %817 = vrot.lane.b32.xlu1 %v1327_v39, %s1384_s16 }
0x1276   :  { %v818_v40 = vpop.permute.xlu1 %817 }
0x1277   :  { %v820_v41 = vmul.f32 %v1325_v33, %v818_v40 }
0x1279   :  { %v832_v42 = vrot.slane %v820_v41, %v1506_v31 }
0x127b   :  { %833 = vrot.lane.b32.xlu0 %v832_v42, %s1385_s17 }
0x12ed   :  { %v834_v43 = vpop.permute.xlu0 %833 }
0x12ee   :  { %1250 = vmatmul.mubr.msk.f32.vlgmr.msra.gmra.mxu1 %vm45_vm2, %v834_v43 }
0x13ae   :  { %v903_v47 = vpop.f32.mrf.mxu1 }
0x13af   :  { %v907_v48 = vadd.f32 %v903_v47, %v824_v46 }
0x13b0   :  { %v1251_v49 = vpop.f32.mrf.mxu1 }
0x13b1   :  { %1328 = vtanh.f32 %v907_v48  ;;  %v1116_v51 = vmul.f32 -1.442695, %v907_v48 }
0x13b3   :  { %1330 = vpow2.f32 %v1116_v51 }
0x13be   :  { %v1329_v50 = vpop.eup %1328 }
0x13bf   :  { %917 = vrot.lane.b32.xlu1 %v1329_v50, %s1384_s16 }
0x13c0   :  { %v1331_v52 = vpop.eup %1330 }
0x13c1   :  { %v911_v53 = vadd.f32 1.0, %v1331_v52 }
0x13c3   :  { %1332 = vrcp.f32 %v911_v53 }
0x13d0   :  { %v1333_v54 = vpop.eup %1332 }
0x13d1   :  { %v915_v57 = vmul.f32 %v1333_v54, %v814_v38 }
0x1431   :  { %v918_v55 = vpop.permute.xlu1 %917 }
0x1432   :  { %v920_v56 = vmul.f32 %v1333_v54, %v918_v55 }
0x1434   :  { %922 = vrot.lane.b32.xlu0 %v920_v56, %s1385_s17 }
0x14a6   :  { %v923_v58 = vpop.permute.xlu0 %922 }
0x14a7   :  { %v925_v8 = vadd.f32 %v923_v58, %v915_v57 }
0x14a9   :  { %1334 = vtanh.f32 %v925_v8 }
0x14b6   :  { %v1335_v63 = vpop.eup %1334 }
0x14b7   :  { %928 = vrot.lane.b32.xlu1 %v1335_v63, %s1384_s16  ;;  %s1387_s16 = smov 120  }
0x1529   :  { %v929_v0 = vpop.permute.xlu1 %928 }
0x152a   :  { %v931_v5 = vmul.f32 %v1333_v54, %v929_v0 }
0x152c   :  { %v939_v6 = vrot.slane %v931_v5, %v1506_v31 }
0x152e   :  { %940 = vrot.lane.b32.xlu0 %v939_v6, %s1385_s17  ;;  %s1388_s17 = smov [#allocation4]  }
0x152f   :  { %s1067_s1 = sshll.u32 %s1388_s17, 4  ;;  %s1068_s1 = int_to_ptr.vmem [resolvable:$true] %s1067_s1 }
0x1530   :  { %s1338_s18 = scalar_lea.vmem %s1068_s1, 32  ;;  %p1343_p1 = scmp.lt.s32.totalorder %s1068_s1, %s1068_s1 }
0x1531   :  { %p1339_p0 = scmp.ne.s32.totalorder %s1068_s1, %s1338_s18  ;;  %p1344_p2 = scmp.lt.s32.totalorder %s1338_s18, %s1338_s18 }
0x1533   :  { %p1345_p3 = por %p1344_p2, %p1343_p1 }
0x1535   :  { %p1346_p4 = pnand %p1345_p3, %p1339_p0 }
0x15a0   :  { %v941_v7 = vpop.permute.xlu0 %940 }
0x15a1   :  { %944 = vst.msk [vmem:[#allocation2] sm:$0x3] %vm32_vm0, %v941_v7  ;;  %1261 = vmatmul.mubr.msk.f32.vlgmr.msra.gmra.mxu0 %vm45_vm2, %v941_v7 }
0x1661   :  { %v1039_v1 = vpop.f32.mrf.mxu0 }
0x1662   :  { %v1040_v2 = vadd.f32 %v1117_v9, %v1039_v1 }
0x1663   :  { %v1262_v10 = vpop.f32.mrf.mxu0 }
0x1664   :  { %v1051_v3 = vmul.f32 0.5, %v1040_v2  ;;  %1046 = vrot.lane.b32.xlu0 %v1040_v2, %s1387_s16  ;;  %1044 = vst.msk [vmem:[#allocation4] sm:$0x3] %vm1043_vm3, %v1040_v2 }
0x1666   :  { %v1052_v11 = vmul.f32 1.442695, %v1051_v3 }
0x1668   :  { %1336 = vpow2.f32 %v1052_v11 }
0x1669   :  { %1349 = shalt.err (!%p1346_p4)
}
0x166a   :  { %1070 = dma.vmem_to_hbm [thread:$0]  %s1068_s1, 32, %s1674_s6, [#allocation5]   ;;  %v952_v12 = vrot.slane %v925_v8, %v1506_v31 }
0x166b   :  { %s1389_s20 = smov 96   ;;  %s1390_s21 = smov [#allocation6]  }
0x166c   :  { %s1077_s22 = sshll.u32 %s1390_s21, 4  ;;  %s1078_s22 = int_to_ptr.vmem [resolvable:$true] %s1077_s22 }
0x166d   :  { %s1358_s23 = scalar_lea.vmem %s1078_s22, 32  ;;  %p1363_p6 = scmp.lt.s32.totalorder %s1078_s22, %s1078_s22 }
0x166e   :  { %p1359_p5 = scmp.ne.s32.totalorder %s1078_s22, %s1358_s23  ;;  %p1364_p7 = scmp.lt.s32.totalorder %s1358_s23, %s1358_s23 }
0x1670   :  { %p1365_p8 = por %p1364_p7, %p1363_p6 }
0x1672   :  { %p1366_p9 = pnand %p1365_p8, %p1359_p5 }
0x1675   :  { %v1337_v4 = vpop.eup %1336 }
0x1676   :  { %1055 = vrot.lane.b32.xlu1 %v1337_v4, %s1387_s16 }
0x167a   :  { %953 = vrot.lane.b32.xlu1 %v952_v12, %s1389_s20 }
0x16d6   :  { %v1047_v13 = vpop.permute.xlu0 %1046 }
0x16d7   :  { %1049 = vst.msk [vmem:[#allocation6] sm:$0x3] %vm1043_vm3, %v1047_v13 }
0x16d8   :  { %1369 = shalt.err (!%p1366_p9)
}
0x16d9   :  { %1080 = dma.vmem_to_hbm [thread:$0]  %s1078_s22, 32, %s1675_s7, [#allocation7]   ;;  %v1050_v31 = vld [vmem:[%s1673_s5] sm:$0x3] }
0x16e8   :  { %v1056_v14 = vpop.permute.xlu1 %1055 }
0x16e9   :  { %v1058_v15 = vmul.f32 %v1056_v14, %v1050_v31 }
0x16eb   :  { %v1059_v16 = vadd.f32 %v1058_v15, %v1040_v2 }
0x16ec   :  { %v954_v17 = vpop.permute.xlu1 %953 }
0x16ed   :  { %1060 = vst.msk [vmem:[%s1676_s8] sm:$0x3] %vm1043_vm3, %v1059_v16 }
0x16ee   :  { %956 = vst.msk [vmem:[#allocation3] sm:$0x3] %vm32_vm0, %v954_v17 }
0x16ef   :  { %1378 = dma.done.wait [#allocation5], 32  }
0x16f0   :  { %1379 = vsyncadd [#allocation5], 4294967264 }
0x16f1   :  { %1380 = dma.done.wait [#allocation7], 32  }
0x16f2   :  { %1381 = vsyncadd [#allocation7], 4294967264 }
0x16f3   :  { %1091 = vsyncpa [#allocation5], 1 }
0x16f4   :  { %1092 = vsyncpa [#allocation7], 1 }

// kernel: topic_guided_vae_forward.8
= control target key start
LH: loop header
LB: loop body
LE: loop exit
PB: predicated region body
PF: predicated region fallthrough
CT: control target
= control target key end

     0   :  { %vm38_vm0 = vcmask 1043456   ;;  %v1446_v0 = vmov 0.0   ;;  %vm1447_vm1 = vmmov 0   ;;  %vm34_vm2 = vcmask 97280   ;;  %s1448_s7 = smov 64   ;;  %s1449_s8 = smov 32   ;;  %s1754_s1 = inlined_call_operand.vmem [shape: f32[12,32], index: 1, kind: input, shape index: {}]   ;;  %s1755_s0 = inlined_call_operand.vmem [shape: f32[2,12], index: 0, kind: input, shape index: {}]   ;;  %s1756_s4 = inlined_call_operand.vmem [shape: f32[32,128], index: 4, kind: input, shape index: {}]   ;;  %s1757_s2 = inlined_call_operand.vmem [shape: f32[1,32], index: 2, kind: input, shape index: {}]   ;;  %s1758_s3 = inlined_call_operand.vmem [shape: bf16[8,2,128], index: 3, kind: input, shape index: {}]   ;;  %s1759_s5 = inlined_call_operand.vmem [shape: bf16[8,2,32], index: 5, kind: output, shape index: {}]  }
   0x1   :  { %1278 = vmatprep.subr.mxu0 %v1446_v0  ;;  %v26_v1 = vld [vmem:[%s1754_s1 + $0x8] sm:$0xf]  ;;  %v25_v2 = vld [vmem:[%s1754_s1] sm:$0xff]  ;;  %1282 = vmatprep.mubr.msk.f32.mxu0 %vm1447_vm1, %v1446_v0  ;;  %vm113_vm3 = vcmask 254976   ;;  %v1507_v4 = vld [vmem:[%s1756_s4 + $0x18] sm:$0xff]  ;;  %vm124_vm4 = vcmask 261120   ;;  %v239_v32 = vlaneseq }
   0x2   :  { %1279 = vmatpush3.msk.msra.mxu0 %vm38_vm0, %v26_v1  ;;  %v24_v3 = vld [vmem:[%s1755_s0] sm:$0x3]  ;;  %1285 = vmatprep.subr.mxu1 %v1446_v0  ;;  %115 = vst.msk [vmem:[#allocation3] sm:$0x3] %vm113_vm3, %v1446_v0  ;;  %v1512_v5 = vld [vmem:[%s1756_s4 + $0x10] sm:$0xff]  ;;  %v1520_v6 = vld [vmem:[%s1756_s4 + $0x8] sm:$0xff] }
   0x3   :  { %1280 = vmatprep.subr.mxu0 %v1446_v0  ;;  %1293 = vmatprep.mubr.msk.f32.mxu1 %vm1447_vm1, %v1446_v0  ;;  %v1529_v7 = vld [vmem:[%s1756_s4] sm:$0xff]  ;;  %v1450_v33 = vmov 1983009808   ;;  %v1562_v35 = vshrl.u32 %v239_v32, 7  ;;  %vm253_vm5 = vcmask 253952  }
   0x4   :  { %1281 = vmatpush3.msra.mxu0 %v25_v2  ;;  %1286 = vmatpush3.msra.mxu1 %v1507_v4  ;;  %v1201_v8 = vld [vmem:[%s1757_s2] ss:$0 sm:$0xff]  ;;  %v260_v34 = vunpack.c.l.s4 %v1450_v33  ;;  %v1207_v42 = vld [vmem:[%s1758_s3 + $0x1] sm:$0x1]  ;;  %v1211_v62 = vld [vmem:[%s1758_s3 + $0x2] sm:$0x1] }
   0x5   :  { %1283 = vmatmul.mubr.msk.f32.vlgmr.msra.gmra.mxu0 %vm34_vm2, %v24_v3  ;;  %1296 = vmatprep.subr.mxu0 %v1446_v0  ;;  %v122_v14 = vld [vmem:[%s1758_s3] sm:$0x1]  ;;  %v257_v43 = vunpack.c.l.bf16 %v1207_v42  ;;  %v388_v63 = vunpack.c.l.bf16 %v1211_v62 }
   0x6   :  { %1304 = vmatprep.mubr.msk.f32.mxu0 %vm1447_vm1, %v1446_v0  ;;  %1297 = vmatpush3.msra.mxu0 %v1507_v4  ;;  %v123_v15 = vunpack.c.l.bf16 %v122_v14  ;;  %v261_v36 = vunpack.c.0.s8 %v260_v34 }
   0x7   :  { %1287 = vmatprep.subr.mxu1 %v1446_v0  ;;  %1298 = vmatprep.subr.mxu0 %v1446_v0 }
   0x8   :  { %1288 = vmatpush3.msra.mxu1 %v1512_v5  ;;  %1299 = vmatpush3.msra.mxu0 %v1512_v5  ;;  %v1565_v37 = vsub.s32 %v261_v36, %v1562_v35 }
   0x9   :  { %1289 = vmatprep.subr.mxu1 %v1446_v0  ;;  %1300 = vmatprep.subr.mxu0 %v1446_v0  ;;  %v1206_v20 = vld.sshfl [vmem:[#allocation3] sm:$0x3 pattern:$0x76325410] }
   0xa   :  { %1290 = vmatpush3.msra.mxu1 %v1520_v6  ;;  %1301 = vmatpush3.msra.mxu0 %v1520_v6 }
   0xb   :  { %1291 = vmatprep.subr.mxu1 %v1446_v0  ;;  %1302 = vmatprep.subr.mxu0 %v1446_v0 }
   0xc   :  { %1292 = vmatpush3.msra.mxu1 %v1529_v7  ;;  %1303 = vmatpush3.msra.mxu0 %v1529_v7 }
   0xd   :  { %1307 = vmatprep.subr.mxu1 %v1446_v0  ;;  %1318 = vmatprep.subr.mxu0 %v1446_v0 }
  0xc5   :  { %v108_v9 = vpop.f32.mrf.mxu0 }
  0xc6   :  { %v109_v10 = vadd.f32 %v1201_v8, %v108_v9 }
  0xc7   :  { %v1284_v11 = vpop.f32.mrf.mxu0 }
  0xc8   :  { %1380 = vtanh.f32 %v109_v10 }
  0xd5   :  { %v1381_v12 = vpop.eup %1380 }
  0xd6   :  { %114 = vst.msk [vmem:[#allocation2] sm:$0x3] %vm113_vm3, %v1381_v12 }
  0xdd   :  { %v120_v13 = vld [vmem:[#allocation2] sm:$0x3] }
  0xde   :  { %1294 = vmatmul.mubr.msk.f32.vlgmr.msra.gmra.mxu1 %vm124_vm4, %v120_v13 }
  0xdf   :  { %1308 = vmatpush3.msra.mxu1 %v1507_v4  ;;  %1315 = vmatprep.mubr.msk.f32.mxu1 %vm1447_vm1, %v1446_v0 }
  0xe0   :  { %1309 = vmatprep.subr.mxu1 %v1446_v0 }
  0xe1   :  { %1310 = vmatpush3.msra.mxu1 %v1512_v5 }
  0xe2   :  { %1311 = vmatprep.subr.mxu1 %v1446_v0 }
  0xe3   :  { %1312 = vmatpush3.msra.mxu1 %v1520_v6 }
  0xe4   :  { %1313 = vmatprep.subr.mxu1 %v1446_v0 }
  0xe5   :  { %1314 = vmatpush3.msra.mxu1 %v1529_v7 }
  0xe6   :  { %1329 = vmatprep.subr.mxu1 %v1446_v0 }
 0x19e   :  { %v194_v16 = vpop.f32.mrf.mxu1 }
 0x19f   :  { %v198_v17 = vadd.f32 %v194_v16, %v123_v15 }
 0x1a0   :  { %v1295_v18 = vpop.f32.mrf.mxu1 }
 0x1a1   :  { %1382 = vtanh.f32 %v198_v17  ;;  %v1205_v21 = vmul.f32 -1.442695, %v198_v17 }
 0x1a3   :  { %1384 = vpow2.f32 %v1205_v21 }
 0x1ae   :  { %v1383_v19 = vpop.eup %1382 }
 0x1af   :  { %219 = vrot.lane.b32.xlu0 %v1383_v19, %s1448_s7 }
 0x1b0   :  { %v1385_v22 = vpop.eup %1384 }
 0x1b1   :  { %v202_v23 = vadd.f32 1.0, %v1385_v22 }
 0x1b3   :  { %214 = vrot.lane.b32.xlu0 %v1206_v20, %s1449_s8  ;;  %1386 = vrcp.f32 %v202_v23  ;;  %v1215_v23 = vld [vmem:[%s1758_s3 + $0x3] sm:$0x1] }
 0x1c0   :  { %v1387_v24 = vpop.eup %1386 }
 0x221   :  { %v220_v25 = vpop.permute.xlu0 %219 }
 0x222   :  { %v222_v26 = vmul.f32 %v1387_v24, %v220_v25 }
 0x224   :  { %224 = vrot.lane.b32.xlu1 %v222_v26, %s1449_s8 }
 0x225   :  { %v215_v27 = vpop.permute.xlu0 %214 }
 0x226   :  { %v217_v28 = vmul.f32 %v1387_v24, %v215_v27 }
 0x296   :  { %v225_v29 = vpop.permute.xlu1 %224 }
 0x297   :  { %v227_v30 = vadd.f32 %v225_v29, %v217_v28 }
 0x299   :  { %1388 = vtanh.f32 %v227_v30 }
 0x2a6   :  { %v1389_v31 = vpop.eup %1388 }
 0x2a7   :  { %230 = vrot.lane.b32.xlu1 %v1389_v31, %s1448_s7 }
 0x319   :  { %v231_v38 = vpop.permute.xlu1 %230 }
 0x31a   :  { %v1567_v39 = vmul.f32 %v1387_v24, %v231_v38  ;;  %v519_v24 = vunpack.c.l.bf16 %v1215_v23 }
 0x31c   :  { %v265_v40 = vrot.slane %v1567_v39, %v1565_v37 }
 0x31e   :  { %266 = vrot.lane.b32.xlu0 %v265_v40, %s1449_s8 }
 0x390   :  { %v267_v41 = vpop.permute.xlu0 %266 }
 0x391   :  { %1305 = vmatmul.mubr.msk.f32.vlgmr.msra.gmra.mxu0 %vm124_vm4, %v267_v41 }
 0x392   :  { %1319 = vmatpush3.msra.mxu0 %v1507_v4  ;;  %1326 = vmatprep.mubr.msk.f32.mxu0 %vm1447_vm1, %v1446_v0 }
 0x393   :  { %1320 = vmatprep.subr.mxu0 %v1446_v0 }
 0x394   :  { %1321 = vmatpush3.msra.mxu0 %v1512_v5 }
 0x395   :  { %1322 = vmatprep.subr.mxu0 %v1446_v0 }
 0x396   :  { %1323 = vmatpush3.msra.mxu0 %v1520_v6 }
 0x397   :  { %1324 = vmatprep.subr.mxu0 %v1446_v0 }
 0x398   :  { %1325 = vmatpush3.msra.mxu0 %v1529_v7 }
 0x399   :  { %1340 = vmatprep.subr.mxu0 %v1446_v0 }
 0x451   :  { %v336_v44 = vpop.f32.mrf.mxu0 }
 0x452   :  { %v340_v45 = vadd.f32 %v336_v44, %v257_v43 }
 0x453   :  { %v1306_v46 = vpop.f32.mrf.mxu0 }
 0x454   :  { %1390 = vtanh.f32 %v340_v45  ;;  %v1209_v48 = vmul.f32 -1.442695, %v340_v45  ;;  %v1219_v46 = vld [vmem:[%s1758_s3 + $0x4] sm:$0x1] }
 0x456   :  { %1392 = vpow2.f32 %v1209_v48 }
 0x461   :  { %v1391_v47 = vpop.eup %1390 }
 0x462   :  { %350 = vrot.lane.b32.xlu1 %v1391_v47, %s1448_s7  ;;  %v650_v47 = vunpack.c.l.bf16 %v1219_v46 }
 0x463   :  { %v1393_v49 = vpop.eup %1392 }
 0x464   :  { %v344_v50 = vadd.f32 1.0, %v1393_v49 }
 0x466   :  { %1394 = vrcp.f32 %v344_v50 }
 0x473   :  { %v1395_v51 = vpop.eup %1394 }
 0x474   :  { %v348_v54 = vmul.f32 %v1395_v51, %v227_v30 }
 0x4d4   :  { %v351_v52 = vpop.permute.xlu1 %350 }
 0x4d5   :  { %v353_v53 = vmul.f32 %v1395_v51, %v351_v52 }
 0x4d7   :  { %355 = vrot.lane.b32.xlu0 %v353_v53, %s1449_s8 }
 0x549   :  { %v356_v55 = vpop.permute.xlu0 %355 }
 0x54a   :  { %v358_v56 = vadd.f32 %v356_v55, %v348_v54 }
 0x54c   :  { %1396 = vtanh.f32 %v358_v56 }
 0x559   :  { %v1397_v57 = vpop.eup %1396 }
 0x55a   :  { %361 = vrot.lane.b32.xlu1 %v1397_v57, %s1448_s7 }
 0x5cc   :  { %v362_v58 = vpop.permute.xlu1 %361 }
 0x5cd   :  { %v1589_v59 = vmul.f32 %v1395_v51, %v362_v58 }
 0x5cf   :  { %v396_v60 = vrot.slane %v1589_v59, %v1565_v37 }
 0x5d1   :  { %397 = vrot.lane.b32.xlu0 %v396_v60, %s1449_s8 }
 0x643   :  { %v398_v61 = vpop.permute.xlu0 %397 }
 0x644   :  { %1316 = vmatmul.mubr.msk.f32.vlgmr.msra.gmra.mxu1 %vm124_vm4, %v398_v61 }
 0x645   :  { %1330 = vmatpush3.msra.mxu1 %v1507_v4  ;;  %1337 = vmatprep.mubr.msk.f32.mxu1 %vm1447_vm1, %v1446_v0 }
 0x646   :  { %1331 = vmatprep.subr.mxu1 %v1446_v0 }
 0x647   :  { %1332 = vmatpush3.msra.mxu1 %v1512_v5 }
 0x648   :  { %1333 = vmatprep.subr.mxu1 %v1446_v0 }
 0x649   :  { %1334 = vmatpush3.msra.mxu1 %v1520_v6 }
 0x64a   :  { %1335 = vmatprep.subr.mxu1 %v1446_v0 }
 0x64b   :  { %1336 = vmatpush3.msra.mxu1 %v1529_v7 }
 0x64c   :  { %1351 = vmatprep.subr.mxu1 %v1446_v0 }
 0x704   :  { %v467_v1 = vpop.f32.mrf.mxu1 }
 0x705   :  { %v471_v2 = vadd.f32 %v467_v1, %v388_v63 }
 0x706   :  { %v1317_v3 = vpop.f32.mrf.mxu1 }
 0x707   :  { %1398 = vtanh.f32 %v471_v2  ;;  %v1213_v9 = vmul.f32 -1.442695, %v471_v2 }
 0x709   :  { %1400 = vpow2.f32 %v1213_v9 }
 0x714   :  { %v1399_v8 = vpop.eup %1398 }
 0x715   :  { %481 = vrot.lane.b32.xlu1 %v1399_v8, %s1448_s7  ;;  %v1223_v8 = vld [vmem:[%s1758_s3 + $0x5] sm:$0x1] }
 0x716   :  { %v1401_v10 = vpop.eup %1400 }
 0x717   :  { %v475_v11 = vadd.f32 1.0, %v1401_v10 }
 0x719   :  { %1402 = vrcp.f32 %v475_v11 }
 0x726   :  { %v1403_v12 = vpop.eup %1402 }
 0x727   :  { %v479_v15 = vmul.f32 %v1403_v12, %v358_v56 }
 0x787   :  { %v482_v13 = vpop.permute.xlu1 %481 }
 0x788   :  { %v484_v14 = vmul.f32 %v1403_v12, %v482_v13 }
 0x78a   :  { %486 = vrot.lane.b32.xlu0 %v484_v14, %s1449_s8 }
 0x7fc   :  { %v487_v16 = vpop.permute.xlu0 %486 }
 0x7fd   :  { %v489_v17 = vadd.f32 %v487_v16, %v479_v15 }
 0x7ff   :  { %1404 = vtanh.f32 %v489_v17 }
 0x80c   :  { %v1405_v18 = vpop.eup %1404 }
 0x80d   :  { %492 = vrot.lane.b32.xlu1 %v1405_v18, %s1448_s7 }
 0x87f   :  { %v493_v19 = vpop.permute.xlu1 %492 }
 0x880   :  { %v1611_v20 = vmul.f32 %v1403_v12, %v493_v19 }
 0x882   :  { %v527_v21 = vrot.slane %v1611_v20, %v1565_v37 }
 0x884   :  { %528 = vrot.lane.b32.xlu0 %v527_v21, %s1449_s8 }
 0x8f6   :  { %v529_v22 = vpop.permute.xlu0 %528 }
 0x8f7   :  { %1327 = vmatmul.mubr.msk.f32.vlgmr.msra.gmra.mxu0 %vm124_vm4, %v529_v22 }
 0x8f8   :  { %1341 = vmatpush3.msra.mxu0 %v1507_v4  ;;  %1348 = vmatprep.mubr.msk.f32.mxu0 %vm1447_vm1, %v1446_v0 }
 0x8f9   :  { %1342 = vmatprep.subr.mxu0 %v1446_v0 }
 0x8fa   :  { %1343 = vmatpush3.msra.mxu0 %v1512_v5 }
 0x8fb   :  { %1344 = vmatprep.subr.mxu0 %v1446_v0 }
 0x8fc   :  { %1345 = vmatpush3.msra.mxu0 %v1520_v6 }
 0x8fd   :  { %1346 = vmatprep.subr.mxu0 %v1446_v0 }
 0x8fe   :  { %1347 = vmatpush3.msra.mxu0 %v1529_v7 }
 0x8ff   :  { %1362 = vmatprep.subr.mxu0 %v1446_v0 }
 0x9b7   :  { %v598_v25 = vpop.f32.mrf.mxu0 }
 0x9b8   :  { %v602_v26 = vadd.f32 %v598_v25, %v519_v24  ;;  %v1227_v24 = vld [vmem:[%s1758_s3 + $0x6] sm:$0x1] }
 0x9b9   :  { %v1328_v27 = vpop.f32.mrf.mxu0  ;;  %v912_v25 = vunpack.c.l.bf16 %v1227_v24 }
 0x9ba   :  { %1406 = vtanh.f32 %v602_v26  ;;  %v1217_v29 = vmul.f32 -1.442695, %v602_v26 }
 0x9bc   :  { %1408 = vpow2.f32 %v1217_v29 }
 0x9c7   :  { %v1407_v28 = vpop.eup %1406 }
 0x9c8   :  { %612 = vrot.lane.b32.xlu1 %v1407_v28, %s1448_s7 }
 0x9c9   :  { %v1409_v30 = vpop.eup %1408 }
 0x9ca   :  { %v606_v31 = vadd.f32 1.0, %v1409_v30 }
 0x9cc   :  { %1410 = vrcp.f32 %v606_v31 }
 0x9d9   :  { %v1411_v32 = vpop.eup %1410 }
 0x9da   :  { %v610_v36 = vmul.f32 %v1411_v32, %v489_v17 }
 0xa3a   :  { %v613_v33 = vpop.permute.xlu1 %612 }
 0xa3b   :  { %v615_v34 = vmul.f32 %v1411_v32, %v613_v33 }
 0xa3d   :  { %617 = vrot.lane.b32.xlu0 %v615_v34, %s1449_s8 }
 0xaaf   :  { %v618_v38 = vpop.permute.xlu0 %617 }
 0xab0   :  { %v620_v40 = vadd.f32 %v618_v38, %v610_v36 }
 0xab2   :  { %1412 = vtanh.f32 %v620_v40 }
 0xabf   :  { %v1413_v41 = vpop.eup %1412 }
 0xac0   :  { %623 = vrot.lane.b32.xlu1 %v1413_v41, %s1448_s7 }
 0xb32   :  { %v624_v42 = vpop.permute.xlu1 %623 }
 0xb33   :  { %v1633_v43 = vmul.f32 %v1411_v32, %v624_v42 }
 0xb35   :  { %v658_v44 = vrot.slane %v1633_v43, %v1565_v37 }
 0xb37   :  { %659 = vrot.lane.b32.xlu0 %v658_v44, %s1449_s8 }
 0xba9   :  { %v660_v45 = vpop.permute.xlu0 %659 }
 0xbaa   :  { %1338 = vmatmul.mubr.msk.f32.vlgmr.msra.gmra.mxu1 %vm124_vm4, %v660_v45 }
 0xbab   :  { %1352 = vmatpush3.msra.mxu1 %v1507_v4  ;;  %1359 = vmatprep.mubr.msk.f32.mxu1 %vm1447_vm1, %v1446_v0 }
 0xbac   :  { %1353 = vmatprep.subr.mxu1 %v1446_v0 }
 0xbad   :  { %1354 = vmatpush3.msra.mxu1 %v1512_v5 }
 0xbae   :  { %1355 = vmatprep.subr.mxu1 %v1446_v0 }
 0xbaf   :  { %1356 = vmatpush3.msra.mxu1 %v1520_v6 }
 0xbb0   :  { %1357 = vmatprep.subr.mxu1 %v1446_v0 }
 0xbb1   :  { %1358 = vmatpush3.msra.mxu1 %v1529_v7 }
 0xc6a   :  { %v729_v48 = vpop.f32.mrf.mxu1 }
 0xc6b   :  { %v733_v49 = vadd.f32 %v729_v48, %v650_v47  ;;  %v1231_v48 = vld [vmem:[%s1758_s3 + $0x7] sm:$0x1] }
 0xc6c   :  { %v1339_v50 = vpop.f32.mrf.mxu1 }
 0xc6d   :  { %1414 = vtanh.f32 %v733_v49  ;;  %v1221_v52 = vmul.f32 -1.442695, %v733_v49  ;;  %v1043_v49 = vunpack.c.l.bf16 %v1231_v48 }
 0xc6f   :  { %1416 = vpow2.f32 %v1221_v52 }
 0xc7a   :  { %v1415_v51 = vpop.eup %1414 }
 0xc7b   :  { %743 = vrot.lane.b32.xlu1 %v1415_v51, %s1448_s7 }
 0xc7c   :  { %v1417_v53 = vpop.eup %1416 }
 0xc7d   :  { %v737_v54 = vadd.f32 1.0, %v1417_v53 }
 0xc7f   :  { %1418 = vrcp.f32 %v737_v54 }
 0xc8c   :  { %v1419_v55 = vpop.eup %1418 }
 0xc8d   :  { %v741_v58 = vmul.f32 %v1419_v55, %v620_v40 }
 0xced   :  { %v744_v56 = vpop.permute.xlu1 %743 }
 0xcee   :  { %v746_v57 = vmul.f32 %v1419_v55, %v744_v56 }
 0xcf0   :  { %748 = vrot.lane.b32.xlu0 %v746_v57, %s1449_s8  ;;  %v1451_v57 = vmov 1966171168  }
 0xd62   :  { %v749_v60 = vpop.permute.xlu0 %748 }
 0xd63   :  { %v751_v61 = vadd.f32 %v749_v60, %v741_v58  ;;  %v237_v58 = vunpack.c.l.s4 %v1451_v57 }
 0xd65   :  { %1420 = vtanh.f32 %v751_v61  ;;  %v238_v60 = vunpack.c.0.s8 %v237_v58 }
 0xd72   :  { %v1421_v62 = vpop.eup %1420 }
 0xd73   :  { %754 = vrot.lane.b32.xlu1 %v1421_v62, %s1448_s7  ;;  %v234_v62 = vpack.c.bf16 %v1567_v39, %v1567_v39 }
 0xde5   :  { %v755_v63 = vpop.permute.xlu1 %754 }
 0xde6   :  { %v1654_v1 = vmul.f32 %v1419_v55, %v755_v63 }
 0xde8   :  { %v789_v2 = vrot.slane %v1654_v1, %v1565_v37 }
 0xdea   :  { %790 = vrot.lane.b32.xlu0 %v789_v2, %s1449_s8 }
 0xe5c   :  { %v791_v3 = vpop.permute.xlu0 %790 }
 0xe5d   :  { %1349 = vmatmul.mubr.msk.f32.vlgmr.msra.gmra.mxu0 %vm124_vm4, %v791_v3 }
 0xe5e   :  { %1363 = vmatpush3.msra.mxu0 %v1507_v4  ;;  %1370 = vmatprep.mubr.msk.f32.mxu0 %vm1447_vm1, %v1446_v0  ;;  %v781_v4 = vunpack.c.l.bf16 %v1223_v8  ;;  %v496_v8 = vpack.c.bf16 %v1611_v20, %v1611_v20 }
 0xe5f   :  { %1364 = vmatprep.subr.mxu0 %v1446_v0 }
 0xe60   :  { %1365 = vmatpush3.msra.mxu0 %v1512_v5 }
 0xe61   :  { %1366 = vmatprep.subr.mxu0 %v1446_v0 }
 0xe62   :  { %1367 = vmatpush3.msra.mxu0 %v1520_v6 }
 0xe63   :  { %1368 = vmatprep.subr.mxu0 %v1446_v0 }
 0xe64   :  { %1369 = vmatpush3.msra.mxu0 %v1529_v7 }
 0xf1d   :  { %v860_v9 = vpop.f32.mrf.mxu0 }
 0xf1e   :  { %v864_v10 = vadd.f32 %v860_v9, %v781_v4 }
 0xf1f   :  { %v1350_v11 = vpop.f32.mrf.mxu0 }
 0xf20   :  { %1422 = vtanh.f32 %v864_v10  ;;  %v1225_v5 = vmul.f32 -1.442695, %v864_v10  ;;  %v758_v10 = vpack.c.bf16 %v1654_v1, %v1654_v1 }
 0xf22   :  { %1424 = vpow2.f32 %v1225_v5 }
 0xf2d   :  { %v1423_v12 = vpop.eup %1422 }
 0xf2e   :  { %874 = vrot.lane.b32.xlu1 %v1423_v12, %s1448_s7 }
 0xf2f   :  { %v1425_v13 = vpop.eup %1424 }
 0xf30   :  { %v868_v6 = vadd.f32 1.0, %v1425_v13 }
 0xf32   :  { %1426 = vrcp.f32 %v868_v6 }
 0xf3f   :  { %v1427_v0 = vpop.eup %1426 }
 0xf40   :  { %v872_v15 = vmul.f32 %v1427_v0, %v751_v61  ;;  %v241_v61 = vsub.s32 %v238_v60, %v1562_v35 }
 0xf42   :  { %v242_v3 = vrot.slane %v234_v62, %v241_v61  ;;  %v504_v9 = vrot.slane %v496_v8, %v241_v61  ;;  %v766_v35 = vrot.slane %v758_v10, %v241_v61 }
 0xf44   :  { %v249_v11 = vrot.slane %v242_v3, %v241_v61  ;;  %v511_v5 = vrot.slane %v504_v9, %v241_v61  ;;  %v773_v13 = vrot.slane %v766_v35, %v241_v61 }
 0xfa0   :  { %v875_v14 = vpop.permute.xlu1 %874 }
 0xfa1   :  { %v877_v7 = vmul.f32 %v1427_v0, %v875_v14 }
 0xfa3   :  { %879 = vrot.lane.b32.xlu0 %v877_v7, %s1449_s8 }
0x1015   :  { %v880_v16 = vpop.permute.xlu0 %879 }
0x1016   :  { %v882_v17 = vadd.f32 %v880_v16, %v872_v15  ;;  %v365_v15 = vpack.c.bf16 %v1589_v59, %v1589_v59 }
0x1018   :  { %1428 = vtanh.f32 %v882_v17 }
0x1025   :  { %v1429_v18 = vpop.eup %1428 }
0x1026   :  { %885 = vrot.lane.b32.xlu1 %v1429_v18, %s1448_s7  ;;  %v627_v18 = vpack.c.bf16 %v1633_v43, %v1633_v43 }
0x1028   :  { %v635_v59 = vrot.slane %v627_v18, %v241_v61 }
0x1098   :  { %v886_v19 = vpop.permute.xlu1 %885 }
0x1099   :  { %v1675_v21 = vmul.f32 %v1427_v0, %v886_v19 }
0x109b   :  { %v920_v22 = vrot.slane %v1675_v21, %v1565_v37 }
0x109d   :  { %921 = vrot.lane.b32.xlu0 %v920_v22, %s1449_s8 }
0x110f   :  { %v922_v23 = vpop.permute.xlu0 %921 }
0x1110   :  { %1360 = vmatmul.mubr.msk.f32.vlgmr.msra.gmra.mxu1 %vm124_vm4, %v922_v23  ;;  %v889_v23 = vpack.c.bf16 %v1675_v21, %v1675_v21 }
0x11d0   :  { %v991_v26 = vpop.f32.mrf.mxu1 }
0x11d1   :  { %v995_v27 = vadd.f32 %v991_v26, %v912_v25  ;;  %v897_v25 = vrot.slane %v889_v23, %v241_v61  ;;  %v642_v26 = vrot.slane %v635_v59, %v241_v61 }
0x11d2   :  { %v1361_v28 = vpop.f32.mrf.mxu1 }
0x11d3   :  { %1430 = vtanh.f32 %v995_v27  ;;  %v1229_v30 = vmul.f32 -1.442695, %v995_v27  ;;  %v904_v43 = vrot.slane %v897_v25, %v241_v61 }
0x11d5   :  { %1432 = vpow2.f32 %v1229_v30 }
0x11e0   :  { %v1431_v29 = vpop.eup %1430 }
0x11e1   :  { %1005 = vrot.lane.b32.xlu1 %v1431_v29, %s1448_s7 }
0x11e2   :  { %v1433_v31 = vpop.eup %1432 }
0x11e3   :  { %v999_v32 = vadd.f32 1.0, %v1433_v31 }
0x11e5   :  { %1434 = vrcp.f32 %v999_v32 }
0x11f2   :  { %v1435_v33 = vpop.eup %1434 }
0x11f3   :  { %v1003_v38 = vmul.f32 %v1435_v33, %v882_v17  ;;  %v373_v17 = vrot.slane %v365_v15, %v241_v61 }
0x11f5   :  { %v380_v24 = vrot.slane %v373_v17, %v241_v61 }
0x1253   :  { %v1006_v34 = vpop.permute.xlu1 %1005 }
0x1254   :  { %v1008_v36 = vmul.f32 %v1435_v33, %v1006_v34 }
0x1256   :  { %1010 = vrot.lane.b32.xlu0 %v1008_v36, %s1449_s8 }
0x12c8   :  { %v1011_v40 = vpop.permute.xlu0 %1010 }
0x12c9   :  { %v1013_v41 = vadd.f32 %v1011_v40, %v1003_v38 }
0x12cb   :  { %1436 = vtanh.f32 %v1013_v41 }
0x12d8   :  { %v1437_v42 = vpop.eup %1436 }
0x12d9   :  { %1016 = vrot.lane.b32.xlu1 %v1437_v42, %s1448_s7 }
0x134b   :  { %v1017_v44 = vpop.permute.xlu1 %1016 }
0x134c   :  { %v1019_v45 = vmul.f32 %v1435_v33, %v1017_v44 }
0x134e   :  { %v1051_v46 = vrot.slane %v1019_v45, %v1565_v37  ;;  %v1020_v12 = vpack.c.bf16 %v1019_v45, %v1019_v45 }
0x1350   :  { %1052 = vrot.lane.b32.xlu0 %v1051_v46, %s1449_s8  ;;  %v1028_v39 = vrot.slane %v1020_v12, %v241_v61 }
0x1352   :  { %v1035_v20 = vrot.slane %v1028_v39, %v241_v61 }
0x13c2   :  { %v1053_v47 = vpop.permute.xlu0 %1052 }
0x13c3   :  { %1371 = vmatmul.mubr.msk.f32.vlgmr.msra.gmra.mxu0 %vm124_vm4, %v1053_v47 }
0x1483   :  { %v1122_v50 = vpop.f32.mrf.mxu0 }
0x1484   :  { %v1126_v51 = vadd.f32 %v1122_v50, %v1043_v49 }
0x1485   :  { %v1372_v52 = vpop.f32.mrf.mxu0 }
0x1486   :  { %1438 = vtanh.f32 %v1126_v51  ;;  %v1233_v54 = vmul.f32 -1.442695, %v1126_v51 }
0x1488   :  { %1440 = vpow2.f32 %v1233_v54 }
0x1493   :  { %v1439_v53 = vpop.eup %1438 }
0x1494   :  { %1136 = vrot.lane.b32.xlu1 %v1439_v53, %s1448_s7 }
0x1495   :  { %v1441_v55 = vpop.eup %1440 }
0x1496   :  { %v1130_v56 = vadd.f32 1.0, %v1441_v55 }
0x1498   :  { %1442 = vrcp.f32 %v1130_v56 }
0x14a5   :  { %v1443_v63 = vpop.eup %1442 }
0x14a6   :  { %v1134_v6 = vmul.f32 %v1443_v63, %v1013_v41 }
0x1506   :  { %v1137_v2 = vpop.permute.xlu1 %1136 }
0x1507   :  { %v1139_v4 = vmul.f32 %v1443_v63, %v1137_v2 }
0x1509   :  { %1141 = vrot.lane.b32.xlu0 %v1139_v4, %s1449_s8 }
0x150d   :  { %250 = vrot.lane.b32.xlu0 %v249_v11, %s1449_s8 }
0x1511   :  { %512 = vrot.lane.b32.xlu0 %v511_v5, %s1449_s8 }
0x1515   :  { %774 = vrot.lane.b32.xlu0 %v773_v13, %s1449_s8 }
0x1519   :  { %1036 = vrot.lane.b32.xlu0 %v1035_v20, %s1449_s8 }
0x157b   :  { %v1142_v0 = vpop.permute.xlu0 %1141 }
0x157c   :  { %v1144_v14 = vadd.f32 %v1142_v0, %v1134_v6 }
0x157e   :  { %1444 = vtanh.f32 %v1144_v14  ;;  %v1192_v34 = vrot.slane %v1144_v14, %v1565_v37 }
0x157f   :  { %v251_v1 = vpop.permute.xlu0 %250 }
0x1580   :  { %254 = vst.msk [vmem:[%s1759_s5] sm:$0x1] %vm253_vm5, %v251_v1 }
0x1583   :  { %v513_v7 = vpop.permute.xlu0 %512 }
0x1584   :  { %1214 = vst.msk [vmem:[%s1759_s5 + $0x2] sm:$0x1] %vm253_vm5, %v513_v7 }
0x1587   :  { %v775_v16 = vpop.permute.xlu0 %774 }
0x1588   :  { %1222 = vst.msk [vmem:[%s1759_s5 + $0x4] sm:$0x1] %vm253_vm5, %v775_v16 }
0x158b   :  { %v1445_v19 = vpop.eup %1444  ;;  %v1037_v22 = vpop.permute.xlu0 %1036 }
0x158c   :  { %1230 = vst.msk [vmem:[%s1759_s5 + $0x6] sm:$0x1] %vm253_vm5, %v1037_v22  ;;  %1147 = vrot.lane.b32.xlu1 %v1445_v19, %s1448_s7  ;;  %s1452_s7 = smov 96  }
0x1590   :  { %381 = vrot.lane.b32.xlu1 %v380_v24, %s1449_s8 }
0x1594   :  { %643 = vrot.lane.b32.xlu1 %v642_v26, %s1449_s8 }
0x1598   :  { %905 = vrot.lane.b32.xlu1 %v904_v43, %s1449_s8 }
0x15fe   :  { %v1148_v27 = vpop.permute.xlu1 %1147 }
0x15ff   :  { %v1150_v28 = vmul.f32 %v1443_v63, %v1148_v27 }
0x1601   :  { %v1151_v29 = vpack.c.bf16 %v1150_v28, %v1150_v28  ;;  %v1179_v30 = vrot.slane %v1150_v28, %v1565_v37 }
0x1602   :  { %v382_v31 = vpop.permute.xlu1 %381 }
0x1603   :  { %v1159_v32 = vrot.slane %v1151_v29, %v241_v61  ;;  %1210 = vst.msk [vmem:[%s1759_s5 + $0x1] sm:$0x1] %vm253_vm5, %v382_v31  ;;  %1180 = vrot.lane.b32.xlu0 %v1179_v30, %s1449_s8 }
0x1605   :  { %v1166_v21 = vrot.slane %v1159_v32, %v241_v61 }
0x1606   :  { %v644_v33 = vpop.permute.xlu1 %643 }
0x1607   :  { %1218 = vst.msk [vmem:[%s1759_s5 + $0x3] sm:$0x1] %vm253_vm5, %v644_v33  ;;  %1167 = vrot.lane.b32.xlu1 %v1166_v21, %s1449_s8 }
0x160a   :  { %v906_v36 = vpop.permute.xlu1 %905 }
0x160b   :  { %1226 = vst.msk [vmem:[%s1759_s5 + $0x5] sm:$0x1] %vm253_vm5, %v906_v36  ;;  %1193 = vrot.lane.b32.xlu1 %v1192_v34, %s1452_s7 }
0x1675   :  { %v1181_v38 = vpop.permute.xlu0 %1180 }
0x1676   :  { %1184 = vst.msk [vmem:[#allocation2] sm:$0x3] %vm113_vm3, %v1181_v38 }
0x1679   :  { %v1168_v40 = vpop.permute.xlu1 %1167 }
0x167a   :  { %1234 = vst.msk [vmem:[%s1759_s5 + $0x7] sm:$0x1] %vm253_vm5, %v1168_v40 }
0x167d   :  { %v1194_v41 = vpop.permute.xlu1 %1193 }
0x167e   :  { %1196 = vst.msk [vmem:[#allocation3] sm:$0x3] %vm113_vm3, %v1194_v41 }

</bundles_post_ra>
